<compile_context>
chip_gen: v7x
topology: tpu7x:2x2x1
jax: 0.10.0
libtpu: 0.0.40
codegen_flags: <defaults>
</compile_context>

<pallas_src>
import math

import jax
import jax.numpy as jnp
import numpy as np
from jax.experimental import pallas as pl
from jax.experimental.pallas import tpu as pltpu  # noqa: F401  (TPU backend)

# ---------------- small config (consistent with a tiny BERT config) -----------
B, S, H = 2, 8, 32          # batch, seq_len, hidden_size
NH, HD = 2, 16              # num_attention_heads, head_dim (NH * HD == H)
I = 64                      # intermediate_size
L = 3                       # num_labels
NUM_LAYERS = 3              # num_hidden_layers
LN_EPS = 1e-12              # BERT LayerNorm eps
BS = B * S                  # folded batch*seq rows

WPAD = 256                  # packed weight-slab width (lane aligned)
VROWS = 10                  # rows in packed bias/LN slab
VPAD = 128                  # lane-dense row width for bias slab


def _gelu(x):
    # TODO(synk): HF BERT default act is exact erf-GELU; tanh approximation used here.
    return 0.5 * x * (1.0 + jnp.tanh(0.7978845608028654 * (x + 0.044715 * x * x * x)))


def _layernorm(x, g, b):
    m = jnp.mean(x, axis=-1, keepdims=True)
    v = jnp.mean((x - m) ** 2, axis=-1, keepdims=True)
    return (x - m) * jax.lax.rsqrt(v + LN_EPS) * g + b


# ---------------------------- fused Pallas kernel ------------------------------
# Packed weight-slab column layout (all weights with H input rows):
#   [0:96)    wq|wk|wv        (fused QKV)
#   [96:128)  wo
#   [128:192) wi
#   [192:224) pooler W
#   [224:256) classifier W padded with zero cols (real cols 224:224+L)
# Bias/LN slab rows: 0 bqkv(96) | 1 bo | 2 g1 | 3 b1 | 4 bi(64) | 5 bd | 6 g2
#                    7 b2 | 8 bp | 9 bc(padded)
def deebert_fused_kernel(x_ref, mask_ref, hm_ref, w_ref, wd_ref, v_ref,
                         h_ref, ramp_ref):
    h2d = x_ref[...]            # (BS, H) hidden state, carried in vregs across layers
    mask_all = mask_ref[...]    # (NH*BS, BS): block-diag batch mask + key mask, per head
    scale = 1.0 / math.sqrt(HD)

    for l in range(NUM_LAYERS):               # unrolled; layers share one param set
        # ---- fused QKV projection (one MXU op) ----
        qkv = jnp.dot(h2d, w_ref[:, 0:3 * H],
                      preferred_element_type=jnp.float32) + v_ref[0:1, 0:3 * H]  # (BS,3H)

        # ---- attention scores: batch folded, one (BS,HD)@(HD,BS) matmul per head ----
        s_list = []
        for hh in range(NH):
            q_h = qkv[:, hh * HD:(hh + 1) * HD]
            k_h = qkv[:, H + hh * HD:H + (hh + 1) * HD]
            s_list.append(jnp.einsum('qd,kd->qk', q_h, k_h,
                                     preferred_element_type=jnp.float32))
        # heads stacked along sublanes -> single masked softmax for both heads
        s_all = jnp.concatenate(s_list, axis=0) * scale + mask_all       # (NH*BS, BS)
        s_all = s_all - jnp.max(s_all, axis=-1, keepdims=True)
        e = jnp.exp(s_all)
        p_all = e * pl.reciprocal(jnp.sum(e, axis=-1, keepdims=True), approx=False)

        # ---- context: one (BS,BS)@(BS,HD) matmul per head ----
        ctx_heads = []
        for hh in range(NH):
            p_h = p_all[hh * BS:(hh + 1) * BS, :]
            v_h = qkv[:, 2 * H + hh * HD:2 * H + (hh + 1) * HD]
            ctx_heads.append(jnp.dot(p_h, v_h, preferred_element_type=jnp.float32))
        hm = hm_ref[l:l + 1, :]                            # (1,H) per-layer head-mask scale
        ctx2d = jnp.concatenate(ctx_heads, axis=-1) * hm   # (BS, H)

        # ---- attention output + residual + LN ----
        attn = jnp.dot(ctx2d, w_ref[:, 3 * H:4 * H],
                       preferred_element_type=jnp.float32) + v_ref[1:2, 0:H]
        h1 = _layernorm(attn + h2d, v_ref[2:3, 0:H], v_ref[3:4, 0:H])

        # ---- feed-forward + residual + LN ----
        ffn = _gelu(jnp.dot(h1, w_ref[:, 4 * H:4 * H + I],
                            preferred_element_type=jnp.float32) + v_ref[4:5, 0:I])
        ffn_out = jnp.dot(ffn, wd_ref[...],
                          preferred_element_type=jnp.float32) + v_ref[5:6, 0:H]
        h2d = _layernorm(ffn_out + h1, v_ref[6:7, 0:H], v_ref[7:8, 0:H])

        # ---- OffRamp: pooler(tanh(Linear(CLS))) -> dropout(eval=id) -> classifier ----
        cls = jnp.concatenate([h2d[b * S:b * S + 1, :] for b in range(B)], axis=0)  # (B,H)
        pooled = jnp.tanh(jnp.dot(cls, w_ref[:, 4 * H + I:5 * H + I],
                                  preferred_element_type=jnp.float32) + v_ref[8:9, 0:H])
        # classifier cols zero-padded to H -> logits_wide[:, L:] == 0
        logits_wide = jnp.dot(pooled, w_ref[:, 5 * H + I:6 * H + I],
                              preferred_element_type=jnp.float32) + v_ref[9:10, 0:H]
        ramp_ref[l, :, :] = jnp.concatenate([pooled, logits_wide], axis=-1)  # (B, 2H)

    h_ref[...] = h2d            # final hidden state written once


# ---------------------------- parameter packing --------------------------------
_PARAM_SHAPES = [
    (H, H), (1, H), (H, H), (1, H), (H, H), (1, H),      # Wq,bq,Wk,bk,Wv,bv
    (H, H), (1, H), (1, H), (1, H),                      # Wo,bo, LN1 g,b
    (H, I), (1, I), (I, H), (1, H), (1, H), (1, H),      # Wi,bi, Wd,bd, LN2 g,b
    (H, H), (1, H), (H, L), (1, L),                      # pooler W,b, classifier W,b
]


def _pack_params(params):
    (wq, bq, wk, bk, wv, bv, wo, bo, g1, b1,
     wi, bi, wd, bd, g2, b2, wp, bp, wc, bc) = params
    w_h = jnp.concatenate(
        [wq, wk, wv, wo, wi, wp, jnp.pad(wc, ((0, 0), (0, H - L)))], axis=1)  # (H,256)

    def row(v):
        v = v.reshape(1, -1)
        return jnp.pad(v, ((0, 0), (0, VPAD - v.shape[1])))

    vslab = jnp.concatenate(
        [row(jnp.concatenate([bq, bk, bv], axis=1)),   # 0: fused QKV bias
         row(bo), row(g1), row(b1),                    # 1,2,3
         row(bi), row(bd), row(g2), row(b2),           # 4,5,6,7
         row(bp), row(bc)], axis=0)                    # 8,9
    return w_h, wd, vslab


# ---------------------------- pallas_call wrapper ------------------------------
def deebert_encoder_forward(hidden_states, attention_mask, head_mask, params):
    """Non-inference DeeBertEncoder forward: run every layer, collect every ramp."""
    w_h, w_d, vslab = _pack_params(params)
    x2d = hidden_states.reshape(BS, H)

    # Additive attention mask folded with the block-diagonal cross-batch mask:
    # same-batch columns get the usual (1-mask)*-1e4, cross-batch columns get
    # -1e9 so their softmax prob underflows to exactly 0.  Tiled per head
    # (heads are sublane-stacked inside the kernel).
    add = ((1.0 - attention_mask) * -10000.0).astype(jnp.float32)    # (B, S)
    key_mask = add.reshape(1, BS)                                    # (1, BS)
    bid = jnp.arange(BS) // S
    cross = jnp.where(bid[:, None] == bid[None, :], 0.0, -1e9).astype(jnp.float32)
    mask_all = jnp.tile(cross + key_mask, (NH, 1))                   # (NH*BS, BS)

    # head_mask[i] (NH,) -> (NUM_LAYERS, H): each head value repeated HD times.
    hm_exp = jnp.repeat(head_mask, HD, axis=1).astype(jnp.float32)   # (NUM_LAYERS, H)

    last2d, ramp_slab = pl.pallas_call(
        deebert_fused_kernel,
        out_shape=(jax.ShapeDtypeStruct((BS, H), jnp.float32),
                   jax.ShapeDtypeStruct((NUM_LAYERS, B, 2 * H), jnp.float32)),
    )(x2d, mask_all, hm_exp, w_h, w_d, vslab)

    last_hs = last2d.reshape(B, S, H)
    pooled = ramp_slab[:, :, 0:H]              # (NUM_LAYERS, B, H)
    logits = ramp_slab[:, :, H:H + L]          # (NUM_LAYERS, B, L)
    ramps = [(logits[i], pooled[i]) for i in range(NUM_LAYERS)]
    return last_hs, ramps, NUM_LAYERS - 1


# ---------------------------- pure-JAX reference -------------------------------
def ref_encoder(hidden_states, attention_mask, head_mask, params):
    (wq, bq, wk, bk, wv, bv, wo, bo, g1, b1,
     wi, bi, wd, bd, g2, b2, wp, bp, wc, bc) = params
    add_mask = ((1.0 - attention_mask) * -10000.0).reshape(B, 1, S)
    scale = 1.0 / math.sqrt(HD)
    hs = hidden_states
    ramps = []
    for i in range(NUM_LAYERS):
        q = hs @ wq + bq
        k = hs @ wk + bk
        v = hs @ wv + bv
        ctx = []
        for h in range(NH):
            sl = slice(h * HD, (h + 1) * HD)
            sc = jnp.einsum('bqd,bkd->bqk', q[..., sl], k[..., sl]) * scale + add_mask
            p = jax.nn.softmax(sc, axis=-1) * head_mask[i, h]
            ctx.append(jnp.einsum('bqk,bkd->bqd', p, v[..., sl]))
        ctx = jnp.concatenate(ctx, axis=-1)
        attn_out = ctx @ wo + bo
        h1 = _layernorm(attn_out + hs, g1, b1)
        ffn_out = _gelu(h1 @ wi + bi) @ wd + bd
        hs = _layernorm(ffn_out + h1, g2, b2)
        pooled = jnp.tanh(hs[:, 0] @ wp + bp)
        logits = pooled @ wc + bc
        ramps.append((logits, pooled))
    return hs, ramps


# ---------------------------- main ---------------------------------------------
if __name__ == "__main__":
    key = jax.random.PRNGKey(0)
    keys = jax.random.split(key, len(_PARAM_SHAPES) + 1)

    # Shared parameters (BertLayer/OffRamp are replicated objects in the module).
    params = []
    for kk, shape in zip(keys[:-1], _PARAM_SHAPES):
        params.append((0.02 * jax.random.normal(kk, shape)).astype(jnp.float32))
    # LayerNorm gammas -> ones, betas -> zeros (indices 8,9 and 14,15).
    params[8] = jnp.ones((1, H), jnp.float32)
    params[9] = jnp.zeros((1, H), jnp.float32)
    params[14] = jnp.ones((1, H), jnp.float32)
    params[15] = jnp.zeros((1, H), jnp.float32)
    params = tuple(params)

    x = jax.random.normal(keys[-1], (B, S, H), dtype=jnp.float32)
    attention_mask = jnp.ones((B, S), jnp.float32).at[1, -2:].set(0.0)   # binary mask
    head_mask = jnp.ones((NUM_LAYERS, NH), jnp.float32).at[1, 1].set(0.5)

    fwd = jax.jit(deebert_encoder_forward)
    last_hs, ramps, exit_layer = fwd(x, attention_mask, head_mask, params)
    last_hs = jax.block_until_ready(last_hs)

    ref_hs, ref_ramps = ref_encoder(x, attention_mask, head_mask, params)
    np.testing.assert_allclose(np.asarray(last_hs), np.asarray(ref_hs),
                               rtol=1e-4, atol=1e-5)
    for (lg, pd), (rlg, rpd) in zip(ramps, ref_ramps):
        np.testing.assert_allclose(np.asarray(lg), np.asarray(rlg), rtol=1e-4, atol=1e-5)
        np.testing.assert_allclose(np.asarray(pd), np.asarray(rpd), rtol=1e-4, atol=1e-5)
    assert int(exit_layer) == NUM_LAYERS - 1

    print("KERNEL_OK")
</pallas_src>

<mosaic_0001>
module attributes {stable_mosaic.version = 11 : i64} {
  func.func @deebert_fused_kernel(%arg0: memref<16x32xf32, #tpu.memory_space<vmem>>, %arg1: memref<32x16xf32, #tpu.memory_space<vmem>>, %arg2: memref<3x32xf32, #tpu.memory_space<vmem>>, %arg3: memref<32x256xf32, #tpu.memory_space<vmem>>, %arg4: memref<64x32xf32, #tpu.memory_space<vmem>>, %arg5: memref<10x128xf32, #tpu.memory_space<vmem>>, %arg6: memref<16x32xf32, #tpu.memory_space<vmem>>, %arg7: memref<3x2x64xf32, #tpu.memory_space<vmem>>) attributes {dimension_semantics = [], scalar_prefetch = 0 : i64, scratch_operands = 0 : i64, tpu.core_type = #tpu.core_type<tc>} {
    %c0 = arith.constant 0 : index
    %c0_0 = arith.constant 0 : index
    %0 = vector.load %arg0[%c0, %c0_0] : memref<16x32xf32, #tpu.memory_space<vmem>>, vector<16x32xf32>
    %c0_1 = arith.constant 0 : index
    %c0_2 = arith.constant 0 : index
    %1 = vector.load %arg1[%c0_1, %c0_2] : memref<32x16xf32, #tpu.memory_space<vmem>>, vector<32x16xf32>
    %c0_3 = arith.constant 0 : index
    %c0_4 = arith.constant 0 : index
    %2 = vector.load %arg3[%c0_3, %c0_4] : memref<32x256xf32, #tpu.memory_space<vmem>>, vector<32x96xf32>
    %cst = arith.constant dense<0.000000e+00> : vector<16x96xf32>
    %3 = tpu.matmul %0, %2, %cst {dimension_numbers = #tpu.dot_dimension_numbers<[1], [0], [0], [1], [0, 0, 1, 1], [], []>} : vector<16x32xf32>, vector<32x96xf32>, vector<16x96xf32> -> vector<16x96xf32>
    %c0_5 = arith.constant 0 : index
    %c0_6 = arith.constant 0 : index
    %4 = vector.load %arg5[%c0_5, %c0_6] : memref<10x128xf32, #tpu.memory_space<vmem>>, vector<1x96xf32>
    %5 = vector.broadcast %4 : vector<1x96xf32> to vector<16x96xf32>
    %6 = arith.addf %3, %5 : vector<16x96xf32>
    %7 = vector.extract_strided_slice %6 {offsets = [0, 0], sizes = [16, 16], strides = [1, 1]} : vector<16x96xf32> to vector<16x16xf32>
    %8 = vector.extract_strided_slice %6 {offsets = [0, 32], sizes = [16, 16], strides = [1, 1]} : vector<16x96xf32> to vector<16x16xf32>
    "tpu.trace_start"() <{level = 10 : i32, message = "qd,kd->qk"}> : () -> ()
    %cst_7 = arith.constant dense<0.000000e+00> : vector<16x16xf32>
    %9 = tpu.matmul %7, %8, %cst_7 {dimension_numbers = #tpu.dot_dimension_numbers<[1], [1], [0], [0], [0, 0, 1, 0], [], []>} : vector<16x16xf32>, vector<16x16xf32>, vector<16x16xf32> -> vector<16x16xf32>
    "tpu.trace_stop"() : () -> ()
    %10 = vector.extract_strided_slice %6 {offsets = [0, 16], sizes = [16, 16], strides = [1, 1]} : vector<16x96xf32> to vector<16x16xf32>
    %11 = vector.extract_strided_slice %6 {offsets = [0, 48], sizes = [16, 16], strides = [1, 1]} : vector<16x96xf32> to vector<16x16xf32>
    "tpu.trace_start"() <{level = 10 : i32, message = "qd,kd->qk"}> : () -> ()
    %cst_8 = arith.constant dense<0.000000e+00> : vector<16x16xf32>
    %12 = tpu.matmul %10, %11, %cst_8 {dimension_numbers = #tpu.dot_dimension_numbers<[1], [1], [0], [0], [0, 0, 1, 0], [], []>} : vector<16x16xf32>, vector<16x16xf32>, vector<16x16xf32> -> vector<16x16xf32>
    "tpu.trace_stop"() : () -> ()
    %13 = tpu.concatenate %9, %12 in 0 : vector<16x16xf32>, vector<16x16xf32> -> vector<32x16xf32>
    %cst_9 = arith.constant 2.500000e-01 : f32
    %14 = vector.broadcast %cst_9 : f32 to vector<32x16xf32>
    %15 = arith.mulf %13, %14 : vector<32x16xf32>
    %16 = arith.addf %15, %1 : vector<32x16xf32>
    %cst_10 = arith.constant dense<0xFF800000> : vector<32xf32>
    %17 = vector.multi_reduction <maximumf>, %16, %cst_10 [1] : vector<32x16xf32> to vector<32xf32>
    %18 = vector.shape_cast %17 : vector<32xf32> to vector<32x1xf32>
    %19 = vector.broadcast %18 : vector<32x1xf32> to vector<32x16xf32>
    %20 = arith.subf %16, %19 : vector<32x16xf32>
    %21 = math.exp %20 : vector<32x16xf32>
    %cst_11 = arith.constant dense<0.000000e+00> : vector<32xf32>
    %22 = vector.multi_reduction <add>, %21, %cst_11 [1] : vector<32x16xf32> to vector<32xf32>
    %23 = vector.shape_cast %22 : vector<32xf32> to vector<32x1xf32>
    %24 = tpu.reciprocal %23 : vector<32x1xf32> -> vector<32x1xf32>
    %25 = vector.broadcast %24 : vector<32x1xf32> to vector<32x16xf32>
    %26 = arith.mulf %21, %25 : vector<32x16xf32>
    %27 = vector.extract_strided_slice %26 {offsets = [0, 0], sizes = [16, 16], strides = [1, 1]} : vector<32x16xf32> to vector<16x16xf32>
    %28 = vector.extract_strided_slice %6 {offsets = [0, 64], sizes = [16, 16], strides = [1, 1]} : vector<16x96xf32> to vector<16x16xf32>
    %cst_12 = arith.constant dense<0.000000e+00> : vector<16x16xf32>
    %29 = tpu.matmul %27, %28, %cst_12 {dimension_numbers = #tpu.dot_dimension_numbers<[1], [0], [0], [1], [0, 0, 1, 1], [], []>} : vector<16x16xf32>, vector<16x16xf32>, vector<16x16xf32> -> vector<16x16xf32>
    %30 = vector.extract_strided_slice %26 {offsets = [16, 0], sizes = [16, 16], strides = [1, 1]} : vector<32x16xf32> to vector<16x16xf32>
    %31 = vector.extract_strided_slice %6 {offsets = [0, 80], sizes = [16, 16], strides = [1, 1]} : vector<16x96xf32> to vector<16x16xf32>
    %cst_13 = arith.constant dense<0.000000e+00> : vector<16x16xf32>
    %32 = tpu.matmul %30, %31, %cst_13 {dimension_numbers = #tpu.dot_dimension_numbers<[1], [0], [0], [1], [0, 0, 1, 1], [], []>} : vector<16x16xf32>, vector<16x16xf32>, vector<16x16xf32> -> vector<16x16xf32>
    %c0_14 = arith.constant 0 : index
    %c0_15 = arith.constant 0 : index
    %33 = vector.load %arg2[%c0_14, %c0_15] : memref<3x32xf32, #tpu.memory_space<vmem>>, vector<1x32xf32>
    %34 = tpu.concatenate %29, %32 in 1 : vector<16x16xf32>, vector<16x16xf32> -> vector<16x32xf32>
    %35 = vector.broadcast %33 : vector<1x32xf32> to vector<16x32xf32>
    %36 = arith.mulf %34, %35 : vector<16x32xf32>
    %c0_16 = arith.constant 0 : index
    %c96 = arith.constant 96 : index
    %37 = vector.load %arg3[%c0_16, %c96] : memref<32x256xf32, #tpu.memory_space<vmem>>, vector<32x32xf32>
    %cst_17 = arith.constant dense<0.000000e+00> : vector<16x32xf32>
    %38 = tpu.matmul %36, %37, %cst_17 {dimension_numbers = #tpu.dot_dimension_numbers<[1], [0], [0], [1], [0, 0, 1, 1], [], []>} : vector<16x32xf32>, vector<32x32xf32>, vector<16x32xf32> -> vector<16x32xf32>
    %c1 = arith.constant 1 : index
    %c0_18 = arith.constant 0 : index
    %39 = vector.load %arg5[%c1, %c0_18] : memref<10x128xf32, #tpu.memory_space<vmem>>, vector<1x32xf32>
    %40 = vector.broadcast %39 : vector<1x32xf32> to vector<16x32xf32>
    %41 = arith.addf %38, %40 : vector<16x32xf32>
    %42 = arith.addf %41, %0 : vector<16x32xf32>
    %c2 = arith.constant 2 : index
    %c0_19 = arith.constant 0 : index
    %43 = vector.load %arg5[%c2, %c0_19] : memref<10x128xf32, #tpu.memory_space<vmem>>, vector<1x32xf32>
    %c3 = arith.constant 3 : index
    %c0_20 = arith.constant 0 : index
    %44 = vector.load %arg5[%c3, %c0_20] : memref<10x128xf32, #tpu.memory_space<vmem>>, vector<1x32xf32>
    %cst_21 = arith.constant dense<0.000000e+00> : vector<16xf32>
    %45 = vector.multi_reduction <add>, %42, %cst_21 [1] : vector<16x32xf32> to vector<16xf32>
    %46 = vector.shape_cast %45 : vector<16xf32> to vector<16x1xf32>
    %cst_22 = arith.constant 3.200000e+01 : f32
    %47 = vector.broadcast %cst_22 : f32 to vector<16x1xf32>
    %48 = arith.divf %46, %47 : vector<16x1xf32>
    %49 = vector.broadcast %48 : vector<16x1xf32> to vector<16x32xf32>
    %50 = arith.subf %42, %49 : vector<16x32xf32>
    %51 = arith.mulf %50, %50 : vector<16x32xf32>
    %cst_23 = arith.constant dense<0.000000e+00> : vector<16xf32>
    %52 = vector.multi_reduction <add>, %51, %cst_23 [1] : vector<16x32xf32> to vector<16xf32>
    %53 = vector.shape_cast %52 : vector<16xf32> to vector<16x1xf32>
    %cst_24 = arith.constant 3.200000e+01 : f32
    %54 = vector.broadcast %cst_24 : f32 to vector<16x1xf32>
    %55 = arith.divf %53, %54 : vector<16x1xf32>
    %56 = vector.broadcast %48 : vector<16x1xf32> to vector<16x32xf32>
    %57 = arith.subf %42, %56 : vector<16x32xf32>
    %cst_25 = arith.constant 9.99999996E-13 : f32
    %58 = vector.broadcast %cst_25 : f32 to vector<16x1xf32>
    %59 = arith.addf %55, %58 : vector<16x1xf32>
    %60 = math.rsqrt %59 : vector<16x1xf32>
    %61 = vector.broadcast %60 : vector<16x1xf32> to vector<16x32xf32>
    %62 = arith.mulf %57, %61 : vector<16x32xf32>
    %63 = vector.broadcast %43 : vector<1x32xf32> to vector<16x32xf32>
    %64 = arith.mulf %62, %63 : vector<16x32xf32>
    %65 = vector.broadcast %44 : vector<1x32xf32> to vector<16x32xf32>
    %66 = arith.addf %64, %65 : vector<16x32xf32>
    %c0_26 = arith.constant 0 : index
    %c128 = arith.constant 128 : index
    %67 = vector.load %arg3[%c0_26, %c128] : memref<32x256xf32, #tpu.memory_space<vmem>>, vector<32x64xf32>
    %cst_27 = arith.constant dense<0.000000e+00> : vector<16x64xf32>
    %68 = tpu.matmul %66, %67, %cst_27 {dimension_numbers = #tpu.dot_dimension_numbers<[1], [0], [0], [1], [0, 0, 1, 1], [], []>} : vector<16x32xf32>, vector<32x64xf32>, vector<16x64xf32> -> vector<16x64xf32>
    %c4 = arith.constant 4 : index
    %c0_28 = arith.constant 0 : index
    %69 = vector.load %arg5[%c4, %c0_28] : memref<10x128xf32, #tpu.memory_space<vmem>>, vector<1x64xf32>
    %70 = vector.broadcast %69 : vector<1x64xf32> to vector<16x64xf32>
    %71 = arith.addf %68, %70 : vector<16x64xf32>
    %cst_29 = arith.constant 5.000000e-01 : f32
    %72 = vector.broadcast %cst_29 : f32 to vector<16x64xf32>
    %73 = arith.mulf %72, %71 : vector<16x64xf32>
    %cst_30 = arith.constant 4.471500e-02 : f32
    %74 = vector.broadcast %cst_30 : f32 to vector<16x64xf32>
    %75 = arith.mulf %74, %71 : vector<16x64xf32>
    %76 = arith.mulf %75, %71 : vector<16x64xf32>
    %77 = arith.mulf %76, %71 : vector<16x64xf32>
    %78 = arith.addf %71, %77 : vector<16x64xf32>
    %cst_31 = arith.constant 0.797884583 : f32
    %79 = vector.broadcast %cst_31 : f32 to vector<16x64xf32>
    %80 = arith.mulf %79, %78 : vector<16x64xf32>
    %81 = math.tanh %80 : vector<16x64xf32>
    %cst_32 = arith.constant 1.000000e+00 : f32
    %82 = vector.broadcast %cst_32 : f32 to vector<16x64xf32>
    %83 = arith.addf %82, %81 : vector<16x64xf32>
    %84 = arith.mulf %73, %83 : vector<16x64xf32>
    %c0_33 = arith.constant 0 : index
    %c0_34 = arith.constant 0 : index
    %85 = vector.load %arg4[%c0_33, %c0_34] : memref<64x32xf32, #tpu.memory_space<vmem>>, vector<64x32xf32>
    %cst_35 = arith.constant dense<0.000000e+00> : vector<16x32xf32>
    %86 = tpu.matmul %84, %85, %cst_35 {dimension_numbers = #tpu.dot_dimension_numbers<[1], [0], [0], [1], [0, 0, 1, 1], [], []>} : vector<16x64xf32>, vector<64x32xf32>, vector<16x32xf32> -> vector<16x32xf32>
    %c5 = arith.constant 5 : index
    %c0_36 = arith.constant 0 : index
    %87 = vector.load %arg5[%c5, %c0_36] : memref<10x128xf32, #tpu.memory_space<vmem>>, vector<1x32xf32>
    %88 = vector.broadcast %87 : vector<1x32xf32> to vector<16x32xf32>
    %89 = arith.addf %86, %88 : vector<16x32xf32>
    %90 = arith.addf %89, %66 : vector<16x32xf32>
    %c6 = arith.constant 6 : index
    %c0_37 = arith.constant 0 : index
    %91 = vector.load %arg5[%c6, %c0_37] : memref<10x128xf32, #tpu.memory_space<vmem>>, vector<1x32xf32>
    %c7 = arith.constant 7 : index
    %c0_38 = arith.constant 0 : index
    %92 = vector.load %arg5[%c7, %c0_38] : memref<10x128xf32, #tpu.memory_space<vmem>>, vector<1x32xf32>
    %cst_39 = arith.constant dense<0.000000e+00> : vector<16xf32>
    %93 = vector.multi_reduction <add>, %90, %cst_39 [1] : vector<16x32xf32> to vector<16xf32>
    %94 = vector.shape_cast %93 : vector<16xf32> to vector<16x1xf32>
    %cst_40 = arith.constant 3.200000e+01 : f32
    %95 = vector.broadcast %cst_40 : f32 to vector<16x1xf32>
    %96 = arith.divf %94, %95 : vector<16x1xf32>
    %97 = vector.broadcast %96 : vector<16x1xf32> to vector<16x32xf32>
    %98 = arith.subf %90, %97 : vector<16x32xf32>
    %99 = arith.mulf %98, %98 : vector<16x32xf32>
    %cst_41 = arith.constant dense<0.000000e+00> : vector<16xf32>
    %100 = vector.multi_reduction <add>, %99, %cst_41 [1] : vector<16x32xf32> to vector<16xf32>
    %101 = vector.shape_cast %100 : vector<16xf32> to vector<16x1xf32>
    %cst_42 = arith.constant 3.200000e+01 : f32
    %102 = vector.broadcast %cst_42 : f32 to vector<16x1xf32>
    %103 = arith.divf %101, %102 : vector<16x1xf32>
    %104 = vector.broadcast %96 : vector<16x1xf32> to vector<16x32xf32>
    %105 = arith.subf %90, %104 : vector<16x32xf32>
    %cst_43 = arith.constant 9.99999996E-13 : f32
    %106 = vector.broadcast %cst_43 : f32 to vector<16x1xf32>
    %107 = arith.addf %103, %106 : vector<16x1xf32>
    %108 = math.rsqrt %107 : vector<16x1xf32>
    %109 = vector.broadcast %108 : vector<16x1xf32> to vector<16x32xf32>
    %110 = arith.mulf %105, %109 : vector<16x32xf32>
    %111 = vector.broadcast %91 : vector<1x32xf32> to vector<16x32xf32>
    %112 = arith.mulf %110, %111 : vector<16x32xf32>
    %113 = vector.broadcast %92 : vector<1x32xf32> to vector<16x32xf32>
    %114 = arith.addf %112, %113 : vector<16x32xf32>
    %115 = vector.extract_strided_slice %114 {offsets = [0, 0], sizes = [1, 32], strides = [1, 1]} : vector<16x32xf32> to vector<1x32xf32>
    %116 = vector.extract_strided_slice %114 {offsets = [8, 0], sizes = [1, 32], strides = [1, 1]} : vector<16x32xf32> to vector<1x32xf32>
    %117 = tpu.concatenate %115, %116 in 0 : vector<1x32xf32>, vector<1x32xf32> -> vector<2x32xf32>
    %c0_44 = arith.constant 0 : index
    %c192 = arith.constant 192 : index
    %118 = vector.load %arg3[%c0_44, %c192] : memref<32x256xf32, #tpu.memory_space<vmem>>, vector<32x32xf32>
    %cst_45 = arith.constant dense<0.000000e+00> : vector<2x32xf32>
    %119 = tpu.matmul %117, %118, %cst_45 {dimension_numbers = #tpu.dot_dimension_numbers<[1], [0], [0], [1], [0, 0, 1, 1], [], []>} : vector<2x32xf32>, vector<32x32xf32>, vector<2x32xf32> -> vector<2x32xf32>
    %c8 = arith.constant 8 : index
    %c0_46 = arith.constant 0 : index
    %120 = vector.load %arg5[%c8, %c0_46] : memref<10x128xf32, #tpu.memory_space<vmem>>, vector<1x32xf32>
    %121 = vector.broadcast %120 : vector<1x32xf32> to vector<2x32xf32>
    %122 = arith.addf %119, %121 : vector<2x32xf32>
    %123 = math.tanh %122 : vector<2x32xf32>
    %c0_47 = arith.constant 0 : index
    %c224 = arith.constant 224 : index
    %124 = vector.load %arg3[%c0_47, %c224] : memref<32x256xf32, #tpu.memory_space<vmem>>, vector<32x32xf32>
    %cst_48 = arith.constant dense<0.000000e+00> : vector<2x32xf32>
    %125 = tpu.matmul %123, %124, %cst_48 {dimension_numbers = #tpu.dot_dimension_numbers<[1], [0], [0], [1], [0, 0, 1, 1], [], []>} : vector<2x32xf32>, vector<32x32xf32>, vector<2x32xf32> -> vector<2x32xf32>
    %c9 = arith.constant 9 : index
    %c0_49 = arith.constant 0 : index
    %126 = vector.load %arg5[%c9, %c0_49] : memref<10x128xf32, #tpu.memory_space<vmem>>, vector<1x32xf32>
    %127 = vector.broadcast %126 : vector<1x32xf32> to vector<2x32xf32>
    %128 = arith.addf %125, %127 : vector<2x32xf32>
    %129 = tpu.concatenate %123, %128 in 1 : vector<2x32xf32>, vector<2x32xf32> -> vector<2x64xf32>
    %c0_50 = arith.constant 0 : index
    %c0_51 = arith.constant 0 : index
    %c0_52 = arith.constant 0 : index
    %130 = vector.load %arg7[%c0_50, %c0_51, %c0_52] : memref<3x2x64xf32, #tpu.memory_space<vmem>>, vector<1x2x64xf32>
    %131 = vector.shape_cast %130 : vector<1x2x64xf32> to vector<2x64xf32>
    %132 = vector.shape_cast %129 : vector<2x64xf32> to vector<1x2x64xf32>
    tpu.vector_store %arg7[%c0_50, %c0_51, %c0_52], %132 {strides = array<i32>} : memref<3x2x64xf32, #tpu.memory_space<vmem>>, vector<1x2x64xf32>,
    %c0_53 = arith.constant 0 : index
    %c0_54 = arith.constant 0 : index
    %133 = vector.load %arg3[%c0_53, %c0_54] : memref<32x256xf32, #tpu.memory_space<vmem>>, vector<32x96xf32>
    %cst_55 = arith.constant dense<0.000000e+00> : vector<16x96xf32>
    %134 = tpu.matmul %114, %133, %cst_55 {dimension_numbers = #tpu.dot_dimension_numbers<[1], [0], [0], [1], [0, 0, 1, 1], [], []>} : vector<16x32xf32>, vector<32x96xf32>, vector<16x96xf32> -> vector<16x96xf32>
    %c0_56 = arith.constant 0 : index
    %c0_57 = arith.constant 0 : index
    %135 = vector.load %arg5[%c0_56, %c0_57] : memref<10x128xf32, #tpu.memory_space<vmem>>, vector<1x96xf32>
    %136 = vector.broadcast %135 : vector<1x96xf32> to vector<16x96xf32>
    %137 = arith.addf %134, %136 : vector<16x96xf32>
    %138 = vector.extract_strided_slice %137 {offsets = [0, 0], sizes = [16, 16], strides = [1, 1]} : vector<16x96xf32> to vector<16x16xf32>
    %139 = vector.extract_strided_slice %137 {offsets = [0, 32], sizes = [16, 16], strides = [1, 1]} : vector<16x96xf32> to vector<16x16xf32>
    "tpu.trace_start"() <{level = 10 : i32, message = "qd,kd->qk"}> : () -> ()
    %cst_58 = arith.constant dense<0.000000e+00> : vector<16x16xf32>
    %140 = tpu.matmul %138, %139, %cst_58 {dimension_numbers = #tpu.dot_dimension_numbers<[1], [1], [0], [0], [0, 0, 1, 0], [], []>} : vector<16x16xf32>, vector<16x16xf32>, vector<16x16xf32> -> vector<16x16xf32>
    "tpu.trace_stop"() : () -> ()
    %141 = vector.extract_strided_slice %137 {offsets = [0, 16], sizes = [16, 16], strides = [1, 1]} : vector<16x96xf32> to vector<16x16xf32>
    %142 = vector.extract_strided_slice %137 {offsets = [0, 48], sizes = [16, 16], strides = [1, 1]} : vector<16x96xf32> to vector<16x16xf32>
    "tpu.trace_start"() <{level = 10 : i32, message = "qd,kd->qk"}> : () -> ()
    %cst_59 = arith.constant dense<0.000000e+00> : vector<16x16xf32>
    %143 = tpu.matmul %141, %142, %cst_59 {dimension_numbers = #tpu.dot_dimension_numbers<[1], [1], [0], [0], [0, 0, 1, 0], [], []>} : vector<16x16xf32>, vector<16x16xf32>, vector<16x16xf32> -> vector<16x16xf32>
    "tpu.trace_stop"() : () -> ()
    %144 = tpu.concatenate %140, %143 in 0 : vector<16x16xf32>, vector<16x16xf32> -> vector<32x16xf32>
    %cst_60 = arith.constant 2.500000e-01 : f32
    %145 = vector.broadcast %cst_60 : f32 to vector<32x16xf32>
    %146 = arith.mulf %144, %145 : vector<32x16xf32>
    %147 = arith.addf %146, %1 : vector<32x16xf32>
    %cst_61 = arith.constant dense<0xFF800000> : vector<32xf32>
    %148 = vector.multi_reduction <maximumf>, %147, %cst_61 [1] : vector<32x16xf32> to vector<32xf32>
    %149 = vector.shape_cast %148 : vector<32xf32> to vector<32x1xf32>
    %150 = vector.broadcast %149 : vector<32x1xf32> to vector<32x16xf32>
    %151 = arith.subf %147, %150 : vector<32x16xf32>
    %152 = math.exp %151 : vector<32x16xf32>
    %cst_62 = arith.constant dense<0.000000e+00> : vector<32xf32>
    %153 = vector.multi_reduction <add>, %152, %cst_62 [1] : vector<32x16xf32> to vector<32xf32>
    %154 = vector.shape_cast %153 : vector<32xf32> to vector<32x1xf32>
    %155 = tpu.reciprocal %154 : vector<32x1xf32> -> vector<32x1xf32>
    %156 = vector.broadcast %155 : vector<32x1xf32> to vector<32x16xf32>
    %157 = arith.mulf %152, %156 : vector<32x16xf32>
    %158 = vector.extract_strided_slice %157 {offsets = [0, 0], sizes = [16, 16], strides = [1, 1]} : vector<32x16xf32> to vector<16x16xf32>
    %159 = vector.extract_strided_slice %137 {offsets = [0, 64], sizes = [16, 16], strides = [1, 1]} : vector<16x96xf32> to vector<16x16xf32>
    %cst_63 = arith.constant dense<0.000000e+00> : vector<16x16xf32>
    %160 = tpu.matmul %158, %159, %cst_63 {dimension_numbers = #tpu.dot_dimension_numbers<[1], [0], [0], [1], [0, 0, 1, 1], [], []>} : vector<16x16xf32>, vector<16x16xf32>, vector<16x16xf32> -> vector<16x16xf32>
    %161 = vector.extract_strided_slice %157 {offsets = [16, 0], sizes = [16, 16], strides = [1, 1]} : vector<32x16xf32> to vector<16x16xf32>
    %162 = vector.extract_strided_slice %137 {offsets = [0, 80], sizes = [16, 16], strides = [1, 1]} : vector<16x96xf32> to vector<16x16xf32>
    %cst_64 = arith.constant dense<0.000000e+00> : vector<16x16xf32>
    %163 = tpu.matmul %161, %162, %cst_64 {dimension_numbers = #tpu.dot_dimension_numbers<[1], [0], [0], [1], [0, 0, 1, 1], [], []>} : vector<16x16xf32>, vector<16x16xf32>, vector<16x16xf32> -> vector<16x16xf32>
    %c1_65 = arith.constant 1 : index
    %c0_66 = arith.constant 0 : index
    %164 = vector.load %arg2[%c1_65, %c0_66] : memref<3x32xf32, #tpu.memory_space<vmem>>, vector<1x32xf32>
    %165 = tpu.concatenate %160, %163 in 1 : vector<16x16xf32>, vector<16x16xf32> -> vector<16x32xf32>
    %166 = vector.broadcast %164 : vector<1x32xf32> to vector<16x32xf32>
    %167 = arith.mulf %165, %166 : vector<16x32xf32>
    %c0_67 = arith.constant 0 : index
    %c96_68 = arith.constant 96 : index
    %168 = vector.load %arg3[%c0_67, %c96_68] : memref<32x256xf32, #tpu.memory_space<vmem>>, vector<32x32xf32>
    %cst_69 = arith.constant dense<0.000000e+00> : vector<16x32xf32>
    %169 = tpu.matmul %167, %168, %cst_69 {dimension_numbers = #tpu.dot_dimension_numbers<[1], [0], [0], [1], [0, 0, 1, 1], [], []>} : vector<16x32xf32>, vector<32x32xf32>, vector<16x32xf32> -> vector<16x32xf32>
    %c1_70 = arith.constant 1 : index
    %c0_71 = arith.constant 0 : index
    %170 = vector.load %arg5[%c1_70, %c0_71] : memref<10x128xf32, #tpu.memory_space<vmem>>, vector<1x32xf32>
    %171 = vector.broadcast %170 : vector<1x32xf32> to vector<16x32xf32>
    %172 = arith.addf %169, %171 : vector<16x32xf32>
    %173 = arith.addf %172, %114 : vector<16x32xf32>
    %c2_72 = arith.constant 2 : index
    %c0_73 = arith.constant 0 : index
    %174 = vector.load %arg5[%c2_72, %c0_73] : memref<10x128xf32, #tpu.memory_space<vmem>>, vector<1x32xf32>
    %c3_74 = arith.constant 3 : index
    %c0_75 = arith.constant 0 : index
    %175 = vector.load %arg5[%c3_74, %c0_75] : memref<10x128xf32, #tpu.memory_space<vmem>>, vector<1x32xf32>
    %cst_76 = arith.constant dense<0.000000e+00> : vector<16xf32>
    %176 = vector.multi_reduction <add>, %173, %cst_76 [1] : vector<16x32xf32> to vector<16xf32>
    %177 = vector.shape_cast %176 : vector<16xf32> to vector<16x1xf32>
    %cst_77 = arith.constant 3.200000e+01 : f32
    %178 = vector.broadcast %cst_77 : f32 to vector<16x1xf32>
    %179 = arith.divf %177, %178 : vector<16x1xf32>
    %180 = vector.broadcast %179 : vector<16x1xf32> to vector<16x32xf32>
    %181 = arith.subf %173, %180 : vector<16x32xf32>
    %182 = arith.mulf %181, %181 : vector<16x32xf32>
    %cst_78 = arith.constant dense<0.000000e+00> : vector<16xf32>
    %183 = vector.multi_reduction <add>, %182, %cst_78 [1] : vector<16x32xf32> to vector<16xf32>
    %184 = vector.shape_cast %183 : vector<16xf32> to vector<16x1xf32>
    %cst_79 = arith.constant 3.200000e+01 : f32
    %185 = vector.broadcast %cst_79 : f32 to vector<16x1xf32>
    %186 = arith.divf %184, %185 : vector<16x1xf32>
    %187 = vector.broadcast %179 : vector<16x1xf32> to vector<16x32xf32>
    %188 = arith.subf %173, %187 : vector<16x32xf32>
    %cst_80 = arith.constant 9.99999996E-13 : f32
    %189 = vector.broadcast %cst_80 : f32 to vector<16x1xf32>
    %190 = arith.addf %186, %189 : vector<16x1xf32>
    %191 = math.rsqrt %190 : vector<16x1xf32>
    %192 = vector.broadcast %191 : vector<16x1xf32> to vector<16x32xf32>
    %193 = arith.mulf %188, %192 : vector<16x32xf32>
    %194 = vector.broadcast %174 : vector<1x32xf32> to vector<16x32xf32>
    %195 = arith.mulf %193, %194 : vector<16x32xf32>
    %196 = vector.broadcast %175 : vector<1x32xf32> to vector<16x32xf32>
    %197 = arith.addf %195, %196 : vector<16x32xf32>
    %c0_81 = arith.constant 0 : index
    %c128_82 = arith.constant 128 : index
    %198 = vector.load %arg3[%c0_81, %c128_82] : memref<32x256xf32, #tpu.memory_space<vmem>>, vector<32x64xf32>
    %cst_83 = arith.constant dense<0.000000e+00> : vector<16x64xf32>
    %199 = tpu.matmul %197, %198, %cst_83 {dimension_numbers = #tpu.dot_dimension_numbers<[1], [0], [0], [1], [0, 0, 1, 1], [], []>} : vector<16x32xf32>, vector<32x64xf32>, vector<16x64xf32> -> vector<16x64xf32>
    %c4_84 = arith.constant 4 : index
    %c0_85 = arith.constant 0 : index
    %200 = vector.load %arg5[%c4_84, %c0_85] : memref<10x128xf32, #tpu.memory_space<vmem>>, vector<1x64xf32>
    %201 = vector.broadcast %200 : vector<1x64xf32> to vector<16x64xf32>
    %202 = arith.addf %199, %201 : vector<16x64xf32>
    %cst_86 = arith.constant 5.000000e-01 : f32
    %203 = vector.broadcast %cst_86 : f32 to vector<16x64xf32>
    %204 = arith.mulf %203, %202 : vector<16x64xf32>
    %cst_87 = arith.constant 4.471500e-02 : f32
    %205 = vector.broadcast %cst_87 : f32 to vector<16x64xf32>
    %206 = arith.mulf %205, %202 : vector<16x64xf32>
    %207 = arith.mulf %206, %202 : vector<16x64xf32>
    %208 = arith.mulf %207, %202 : vector<16x64xf32>
    %209 = arith.addf %202, %208 : vector<16x64xf32>
    %cst_88 = arith.constant 0.797884583 : f32
    %210 = vector.broadcast %cst_88 : f32 to vector<16x64xf32>
    %211 = arith.mulf %210, %209 : vector<16x64xf32>
    %212 = math.tanh %211 : vector<16x64xf32>
    %cst_89 = arith.constant 1.000000e+00 : f32
    %213 = vector.broadcast %cst_89 : f32 to vector<16x64xf32>
    %214 = arith.addf %213, %212 : vector<16x64xf32>
    %215 = arith.mulf %204, %214 : vector<16x64xf32>
    %c0_90 = arith.constant 0 : index
    %c0_91 = arith.constant 0 : index
    %216 = vector.load %arg4[%c0_90, %c0_91] : memref<64x32xf32, #tpu.memory_space<vmem>>, vector<64x32xf32>
    %cst_92 = arith.constant dense<0.000000e+00> : vector<16x32xf32>
    %217 = tpu.matmul %215, %216, %cst_92 {dimension_numbers = #tpu.dot_dimension_numbers<[1], [0], [0], [1], [0, 0, 1, 1], [], []>} : vector<16x64xf32>, vector<64x32xf32>, vector<16x32xf32> -> vector<16x32xf32>
    %c5_93 = arith.constant 5 : index
    %c0_94 = arith.constant 0 : index
    %218 = vector.load %arg5[%c5_93, %c0_94] : memref<10x128xf32, #tpu.memory_space<vmem>>, vector<1x32xf32>
    %219 = vector.broadcast %218 : vector<1x32xf32> to vector<16x32xf32>
    %220 = arith.addf %217, %219 : vector<16x32xf32>
    %221 = arith.addf %220, %197 : vector<16x32xf32>
    %c6_95 = arith.constant 6 : index
    %c0_96 = arith.constant 0 : index
    %222 = vector.load %arg5[%c6_95, %c0_96] : memref<10x128xf32, #tpu.memory_space<vmem>>, vector<1x32xf32>
    %c7_97 = arith.constant 7 : index
    %c0_98 = arith.constant 0 : index
    %223 = vector.load %arg5[%c7_97, %c0_98] : memref<10x128xf32, #tpu.memory_space<vmem>>, vector<1x32xf32>
    %cst_99 = arith.constant dense<0.000000e+00> : vector<16xf32>
    %224 = vector.multi_reduction <add>, %221, %cst_99 [1] : vector<16x32xf32> to vector<16xf32>
    %225 = vector.shape_cast %224 : vector<16xf32> to vector<16x1xf32>
    %cst_100 = arith.constant 3.200000e+01 : f32
    %226 = vector.broadcast %cst_100 : f32 to vector<16x1xf32>
    %227 = arith.divf %225, %226 : vector<16x1xf32>
    %228 = vector.broadcast %227 : vector<16x1xf32> to vector<16x32xf32>
    %229 = arith.subf %221, %228 : vector<16x32xf32>
    %230 = arith.mulf %229, %229 : vector<16x32xf32>
    %cst_101 = arith.constant dense<0.000000e+00> : vector<16xf32>
    %231 = vector.multi_reduction <add>, %230, %cst_101 [1] : vector<16x32xf32> to vector<16xf32>
    %232 = vector.shape_cast %231 : vector<16xf32> to vector<16x1xf32>
    %cst_102 = arith.constant 3.200000e+01 : f32
    %233 = vector.broadcast %cst_102 : f32 to vector<16x1xf32>
    %234 = arith.divf %232, %233 : vector<16x1xf32>
    %235 = vector.broadcast %227 : vector<16x1xf32> to vector<16x32xf32>
    %236 = arith.subf %221, %235 : vector<16x32xf32>
    %cst_103 = arith.constant 9.99999996E-13 : f32
    %237 = vector.broadcast %cst_103 : f32 to vector<16x1xf32>
    %238 = arith.addf %234, %237 : vector<16x1xf32>
    %239 = math.rsqrt %238 : vector<16x1xf32>
    %240 = vector.broadcast %239 : vector<16x1xf32> to vector<16x32xf32>
    %241 = arith.mulf %236, %240 : vector<16x32xf32>
    %242 = vector.broadcast %222 : vector<1x32xf32> to vector<16x32xf32>
    %243 = arith.mulf %241, %242 : vector<16x32xf32>
    %244 = vector.broadcast %223 : vector<1x32xf32> to vector<16x32xf32>
    %245 = arith.addf %243, %244 : vector<16x32xf32>
    %246 = vector.extract_strided_slice %245 {offsets = [0, 0], sizes = [1, 32], strides = [1, 1]} : vector<16x32xf32> to vector<1x32xf32>
    %247 = vector.extract_strided_slice %245 {offsets = [8, 0], sizes = [1, 32], strides = [1, 1]} : vector<16x32xf32> to vector<1x32xf32>
    %248 = tpu.concatenate %246, %247 in 0 : vector<1x32xf32>, vector<1x32xf32> -> vector<2x32xf32>
    %c0_104 = arith.constant 0 : index
    %c192_105 = arith.constant 192 : index
    %249 = vector.load %arg3[%c0_104, %c192_105] : memref<32x256xf32, #tpu.memory_space<vmem>>, vector<32x32xf32>
    %cst_106 = arith.constant dense<0.000000e+00> : vector<2x32xf32>
    %250 = tpu.matmul %248, %249, %cst_106 {dimension_numbers = #tpu.dot_dimension_numbers<[1], [0], [0], [1], [0, 0, 1, 1], [], []>} : vector<2x32xf32>, vector<32x32xf32>, vector<2x32xf32> -> vector<2x32xf32>
    %c8_107 = arith.constant 8 : index
    %c0_108 = arith.constant 0 : index
    %251 = vector.load %arg5[%c8_107, %c0_108] : memref<10x128xf32, #tpu.memory_space<vmem>>, vector<1x32xf32>
    %252 = vector.broadcast %251 : vector<1x32xf32> to vector<2x32xf32>
    %253 = arith.addf %250, %252 : vector<2x32xf32>
    %254 = math.tanh %253 : vector<2x32xf32>
    %c0_109 = arith.constant 0 : index
    %c224_110 = arith.constant 224 : index
    %255 = vector.load %arg3[%c0_109, %c224_110] : memref<32x256xf32, #tpu.memory_space<vmem>>, vector<32x32xf32>
    %cst_111 = arith.constant dense<0.000000e+00> : vector<2x32xf32>
    %256 = tpu.matmul %254, %255, %cst_111 {dimension_numbers = #tpu.dot_dimension_numbers<[1], [0], [0], [1], [0, 0, 1, 1], [], []>} : vector<2x32xf32>, vector<32x32xf32>, vector<2x32xf32> -> vector<2x32xf32>
    %c9_112 = arith.constant 9 : index
    %c0_113 = arith.constant 0 : index
    %257 = vector.load %arg5[%c9_112, %c0_113] : memref<10x128xf32, #tpu.memory_space<vmem>>, vector<1x32xf32>
    %258 = vector.broadcast %257 : vector<1x32xf32> to vector<2x32xf32>
    %259 = arith.addf %256, %258 : vector<2x32xf32>
    %260 = tpu.concatenate %254, %259 in 1 : vector<2x32xf32>, vector<2x32xf32> -> vector<2x64xf32>
    %c1_114 = arith.constant 1 : index
    %c0_115 = arith.constant 0 : index
    %c0_116 = arith.constant 0 : index
    %261 = vector.load %arg7[%c1_114, %c0_115, %c0_116] : memref<3x2x64xf32, #tpu.memory_space<vmem>>, vector<1x2x64xf32>
    %262 = vector.shape_cast %261 : vector<1x2x64xf32> to vector<2x64xf32>
    %263 = vector.shape_cast %260 : vector<2x64xf32> to vector<1x2x64xf32>
    tpu.vector_store %arg7[%c1_114, %c0_115, %c0_116], %263 {strides = array<i32>} : memref<3x2x64xf32, #tpu.memory_space<vmem>>, vector<1x2x64xf32>,
    %c0_117 = arith.constant 0 : index
    %c0_118 = arith.constant 0 : index
    %264 = vector.load %arg3[%c0_117, %c0_118] : memref<32x256xf32, #tpu.memory_space<vmem>>, vector<32x96xf32>
    %cst_119 = arith.constant dense<0.000000e+00> : vector<16x96xf32>
    %265 = tpu.matmul %245, %264, %cst_119 {dimension_numbers = #tpu.dot_dimension_numbers<[1], [0], [0], [1], [0, 0, 1, 1], [], []>} : vector<16x32xf32>, vector<32x96xf32>, vector<16x96xf32> -> vector<16x96xf32>
    %c0_120 = arith.constant 0 : index
    %c0_121 = arith.constant 0 : index
    %266 = vector.load %arg5[%c0_120, %c0_121] : memref<10x128xf32, #tpu.memory_space<vmem>>, vector<1x96xf32>
    %267 = vector.broadcast %266 : vector<1x96xf32> to vector<16x96xf32>
    %268 = arith.addf %265, %267 : vector<16x96xf32>
    %269 = vector.extract_strided_slice %268 {offsets = [0, 0], sizes = [16, 16], strides = [1, 1]} : vector<16x96xf32> to vector<16x16xf32>
    %270 = vector.extract_strided_slice %268 {offsets = [0, 32], sizes = [16, 16], strides = [1, 1]} : vector<16x96xf32> to vector<16x16xf32>
    "tpu.trace_start"() <{level = 10 : i32, message = "qd,kd->qk"}> : () -> ()
    %cst_122 = arith.constant dense<0.000000e+00> : vector<16x16xf32>
    %271 = tpu.matmul %269, %270, %cst_122 {dimension_numbers = #tpu.dot_dimension_numbers<[1], [1], [0], [0], [0, 0, 1, 0], [], []>} : vector<16x16xf32>, vector<16x16xf32>, vector<16x16xf32> -> vector<16x16xf32>
    "tpu.trace_stop"() : () -> ()
    %272 = vector.extract_strided_slice %268 {offsets = [0, 16], sizes = [16, 16], strides = [1, 1]} : vector<16x96xf32> to vector<16x16xf32>
    %273 = vector.extract_strided_slice %268 {offsets = [0, 48], sizes = [16, 16], strides = [1, 1]} : vector<16x96xf32> to vector<16x16xf32>
    "tpu.trace_start"() <{level = 10 : i32, message = "qd,kd->qk"}> : () -> ()
    %cst_123 = arith.constant dense<0.000000e+00> : vector<16x16xf32>
    %274 = tpu.matmul %272, %273, %cst_123 {dimension_numbers = #tpu.dot_dimension_numbers<[1], [1], [0], [0], [0, 0, 1, 0], [], []>} : vector<16x16xf32>, vector<16x16xf32>, vector<16x16xf32> -> vector<16x16xf32>
    "tpu.trace_stop"() : () -> ()
    %275 = tpu.concatenate %271, %274 in 0 : vector<16x16xf32>, vector<16x16xf32> -> vector<32x16xf32>
    %cst_124 = arith.constant 2.500000e-01 : f32
    %276 = vector.broadcast %cst_124 : f32 to vector<32x16xf32>
    %277 = arith.mulf %275, %276 : vector<32x16xf32>
    %278 = arith.addf %277, %1 : vector<32x16xf32>
    %cst_125 = arith.constant dense<0xFF800000> : vector<32xf32>
    %279 = vector.multi_reduction <maximumf>, %278, %cst_125 [1] : vector<32x16xf32> to vector<32xf32>
    %280 = vector.shape_cast %279 : vector<32xf32> to vector<32x1xf32>
    %281 = vector.broadcast %280 : vector<32x1xf32> to vector<32x16xf32>
    %282 = arith.subf %278, %281 : vector<32x16xf32>
    %283 = math.exp %282 : vector<32x16xf32>
    %cst_126 = arith.constant dense<0.000000e+00> : vector<32xf32>
    %284 = vector.multi_reduction <add>, %283, %cst_126 [1] : vector<32x16xf32> to vector<32xf32>
    %285 = vector.shape_cast %284 : vector<32xf32> to vector<32x1xf32>
    %286 = tpu.reciprocal %285 : vector<32x1xf32> -> vector<32x1xf32>
    %287 = vector.broadcast %286 : vector<32x1xf32> to vector<32x16xf32>
    %288 = arith.mulf %283, %287 : vector<32x16xf32>
    %289 = vector.extract_strided_slice %288 {offsets = [0, 0], sizes = [16, 16], strides = [1, 1]} : vector<32x16xf32> to vector<16x16xf32>
    %290 = vector.extract_strided_slice %268 {offsets = [0, 64], sizes = [16, 16], strides = [1, 1]} : vector<16x96xf32> to vector<16x16xf32>
    %cst_127 = arith.constant dense<0.000000e+00> : vector<16x16xf32>
    %291 = tpu.matmul %289, %290, %cst_127 {dimension_numbers = #tpu.dot_dimension_numbers<[1], [0], [0], [1], [0, 0, 1, 1], [], []>} : vector<16x16xf32>, vector<16x16xf32>, vector<16x16xf32> -> vector<16x16xf32>
    %292 = vector.extract_strided_slice %288 {offsets = [16, 0], sizes = [16, 16], strides = [1, 1]} : vector<32x16xf32> to vector<16x16xf32>
    %293 = vector.extract_strided_slice %268 {offsets = [0, 80], sizes = [16, 16], strides = [1, 1]} : vector<16x96xf32> to vector<16x16xf32>
    %cst_128 = arith.constant dense<0.000000e+00> : vector<16x16xf32>
    %294 = tpu.matmul %292, %293, %cst_128 {dimension_numbers = #tpu.dot_dimension_numbers<[1], [0], [0], [1], [0, 0, 1, 1], [], []>} : vector<16x16xf32>, vector<16x16xf32>, vector<16x16xf32> -> vector<16x16xf32>
    %c2_129 = arith.constant 2 : index
    %c0_130 = arith.constant 0 : index
    %295 = vector.load %arg2[%c2_129, %c0_130] : memref<3x32xf32, #tpu.memory_space<vmem>>, vector<1x32xf32>
    %296 = tpu.concatenate %291, %294 in 1 : vector<16x16xf32>, vector<16x16xf32> -> vector<16x32xf32>
    %297 = vector.broadcast %295 : vector<1x32xf32> to vector<16x32xf32>
    %298 = arith.mulf %296, %297 : vector<16x32xf32>
    %c0_131 = arith.constant 0 : index
    %c96_132 = arith.constant 96 : index
    %299 = vector.load %arg3[%c0_131, %c96_132] : memref<32x256xf32, #tpu.memory_space<vmem>>, vector<32x32xf32>
    %cst_133 = arith.constant dense<0.000000e+00> : vector<16x32xf32>
    %300 = tpu.matmul %298, %299, %cst_133 {dimension_numbers = #tpu.dot_dimension_numbers<[1], [0], [0], [1], [0, 0, 1, 1], [], []>} : vector<16x32xf32>, vector<32x32xf32>, vector<16x32xf32> -> vector<16x32xf32>
    %c1_134 = arith.constant 1 : index
    %c0_135 = arith.constant 0 : index
    %301 = vector.load %arg5[%c1_134, %c0_135] : memref<10x128xf32, #tpu.memory_space<vmem>>, vector<1x32xf32>
    %302 = vector.broadcast %301 : vector<1x32xf32> to vector<16x32xf32>
    %303 = arith.addf %300, %302 : vector<16x32xf32>
    %304 = arith.addf %303, %245 : vector<16x32xf32>
    %c2_136 = arith.constant 2 : index
    %c0_137 = arith.constant 0 : index
    %305 = vector.load %arg5[%c2_136, %c0_137] : memref<10x128xf32, #tpu.memory_space<vmem>>, vector<1x32xf32>
    %c3_138 = arith.constant 3 : index
    %c0_139 = arith.constant 0 : index
    %306 = vector.load %arg5[%c3_138, %c0_139] : memref<10x128xf32, #tpu.memory_space<vmem>>, vector<1x32xf32>
    %cst_140 = arith.constant dense<0.000000e+00> : vector<16xf32>
    %307 = vector.multi_reduction <add>, %304, %cst_140 [1] : vector<16x32xf32> to vector<16xf32>
    %308 = vector.shape_cast %307 : vector<16xf32> to vector<16x1xf32>
    %cst_141 = arith.constant 3.200000e+01 : f32
    %309 = vector.broadcast %cst_141 : f32 to vector<16x1xf32>
    %310 = arith.divf %308, %309 : vector<16x1xf32>
    %311 = vector.broadcast %310 : vector<16x1xf32> to vector<16x32xf32>
    %312 = arith.subf %304, %311 : vector<16x32xf32>
    %313 = arith.mulf %312, %312 : vector<16x32xf32>
    %cst_142 = arith.constant dense<0.000000e+00> : vector<16xf32>
    %314 = vector.multi_reduction <add>, %313, %cst_142 [1] : vector<16x32xf32> to vector<16xf32>
    %315 = vector.shape_cast %314 : vector<16xf32> to vector<16x1xf32>
    %cst_143 = arith.constant 3.200000e+01 : f32
    %316 = vector.broadcast %cst_143 : f32 to vector<16x1xf32>
    %317 = arith.divf %315, %316 : vector<16x1xf32>
    %318 = vector.broadcast %310 : vector<16x1xf32> to vector<16x32xf32>
    %319 = arith.subf %304, %318 : vector<16x32xf32>
    %cst_144 = arith.constant 9.99999996E-13 : f32
    %320 = vector.broadcast %cst_144 : f32 to vector<16x1xf32>
    %321 = arith.addf %317, %320 : vector<16x1xf32>
    %322 = math.rsqrt %321 : vector<16x1xf32>
    %323 = vector.broadcast %322 : vector<16x1xf32> to vector<16x32xf32>
    %324 = arith.mulf %319, %323 : vector<16x32xf32>
    %325 = vector.broadcast %305 : vector<1x32xf32> to vector<16x32xf32>
    %326 = arith.mulf %324, %325 : vector<16x32xf32>
    %327 = vector.broadcast %306 : vector<1x32xf32> to vector<16x32xf32>
    %328 = arith.addf %326, %327 : vector<16x32xf32>
    %c0_145 = arith.constant 0 : index
    %c128_146 = arith.constant 128 : index
    %329 = vector.load %arg3[%c0_145, %c128_146] : memref<32x256xf32, #tpu.memory_space<vmem>>, vector<32x64xf32>
    %cst_147 = arith.constant dense<0.000000e+00> : vector<16x64xf32>
    %330 = tpu.matmul %328, %329, %cst_147 {dimension_numbers = #tpu.dot_dimension_numbers<[1], [0], [0], [1], [0, 0, 1, 1], [], []>} : vector<16x32xf32>, vector<32x64xf32>, vector<16x64xf32> -> vector<16x64xf32>
    %c4_148 = arith.constant 4 : index
    %c0_149 = arith.constant 0 : index
    %331 = vector.load %arg5[%c4_148, %c0_149] : memref<10x128xf32, #tpu.memory_space<vmem>>, vector<1x64xf32>
    %332 = vector.broadcast %331 : vector<1x64xf32> to vector<16x64xf32>
    %333 = arith.addf %330, %332 : vector<16x64xf32>
    %cst_150 = arith.constant 5.000000e-01 : f32
    %334 = vector.broadcast %cst_150 : f32 to vector<16x64xf32>
    %335 = arith.mulf %334, %333 : vector<16x64xf32>
    %cst_151 = arith.constant 4.471500e-02 : f32
    %336 = vector.broadcast %cst_151 : f32 to vector<16x64xf32>
    %337 = arith.mulf %336, %333 : vector<16x64xf32>
    %338 = arith.mulf %337, %333 : vector<16x64xf32>
    %339 = arith.mulf %338, %333 : vector<16x64xf32>
    %340 = arith.addf %333, %339 : vector<16x64xf32>
    %cst_152 = arith.constant 0.797884583 : f32
    %341 = vector.broadcast %cst_152 : f32 to vector<16x64xf32>
    %342 = arith.mulf %341, %340 : vector<16x64xf32>
    %343 = math.tanh %342 : vector<16x64xf32>
    %cst_153 = arith.constant 1.000000e+00 : f32
    %344 = vector.broadcast %cst_153 : f32 to vector<16x64xf32>
    %345 = arith.addf %344, %343 : vector<16x64xf32>
    %346 = arith.mulf %335, %345 : vector<16x64xf32>
    %c0_154 = arith.constant 0 : index
    %c0_155 = arith.constant 0 : index
    %347 = vector.load %arg4[%c0_154, %c0_155] : memref<64x32xf32, #tpu.memory_space<vmem>>, vector<64x32xf32>
    %cst_156 = arith.constant dense<0.000000e+00> : vector<16x32xf32>
    %348 = tpu.matmul %346, %347, %cst_156 {dimension_numbers = #tpu.dot_dimension_numbers<[1], [0], [0], [1], [0, 0, 1, 1], [], []>} : vector<16x64xf32>, vector<64x32xf32>, vector<16x32xf32> -> vector<16x32xf32>
    %c5_157 = arith.constant 5 : index
    %c0_158 = arith.constant 0 : index
    %349 = vector.load %arg5[%c5_157, %c0_158] : memref<10x128xf32, #tpu.memory_space<vmem>>, vector<1x32xf32>
    %350 = vector.broadcast %349 : vector<1x32xf32> to vector<16x32xf32>
    %351 = arith.addf %348, %350 : vector<16x32xf32>
    %352 = arith.addf %351, %328 : vector<16x32xf32>
    %c6_159 = arith.constant 6 : index
    %c0_160 = arith.constant 0 : index
    %353 = vector.load %arg5[%c6_159, %c0_160] : memref<10x128xf32, #tpu.memory_space<vmem>>, vector<1x32xf32>
    %c7_161 = arith.constant 7 : index
    %c0_162 = arith.constant 0 : index
    %354 = vector.load %arg5[%c7_161, %c0_162] : memref<10x128xf32, #tpu.memory_space<vmem>>, vector<1x32xf32>
    %cst_163 = arith.constant dense<0.000000e+00> : vector<16xf32>
    %355 = vector.multi_reduction <add>, %352, %cst_163 [1] : vector<16x32xf32> to vector<16xf32>
    %356 = vector.shape_cast %355 : vector<16xf32> to vector<16x1xf32>
    %cst_164 = arith.constant 3.200000e+01 : f32
    %357 = vector.broadcast %cst_164 : f32 to vector<16x1xf32>
    %358 = arith.divf %356, %357 : vector<16x1xf32>
    %359 = vector.broadcast %358 : vector<16x1xf32> to vector<16x32xf32>
    %360 = arith.subf %352, %359 : vector<16x32xf32>
    %361 = arith.mulf %360, %360 : vector<16x32xf32>
    %cst_165 = arith.constant dense<0.000000e+00> : vector<16xf32>
    %362 = vector.multi_reduction <add>, %361, %cst_165 [1] : vector<16x32xf32> to vector<16xf32>
    %363 = vector.shape_cast %362 : vector<16xf32> to vector<16x1xf32>
    %cst_166 = arith.constant 3.200000e+01 : f32
    %364 = vector.broadcast %cst_166 : f32 to vector<16x1xf32>
    %365 = arith.divf %363, %364 : vector<16x1xf32>
    %366 = vector.broadcast %358 : vector<16x1xf32> to vector<16x32xf32>
    %367 = arith.subf %352, %366 : vector<16x32xf32>
    %cst_167 = arith.constant 9.99999996E-13 : f32
    %368 = vector.broadcast %cst_167 : f32 to vector<16x1xf32>
    %369 = arith.addf %365, %368 : vector<16x1xf32>
    %370 = math.rsqrt %369 : vector<16x1xf32>
    %371 = vector.broadcast %370 : vector<16x1xf32> to vector<16x32xf32>
    %372 = arith.mulf %367, %371 : vector<16x32xf32>
    %373 = vector.broadcast %353 : vector<1x32xf32> to vector<16x32xf32>
    %374 = arith.mulf %372, %373 : vector<16x32xf32>
    %375 = vector.broadcast %354 : vector<1x32xf32> to vector<16x32xf32>
    %376 = arith.addf %374, %375 : vector<16x32xf32>
    %377 = vector.extract_strided_slice %376 {offsets = [0, 0], sizes = [1, 32], strides = [1, 1]} : vector<16x32xf32> to vector<1x32xf32>
    %378 = vector.extract_strided_slice %376 {offsets = [8, 0], sizes = [1, 32], strides = [1, 1]} : vector<16x32xf32> to vector<1x32xf32>
    %379 = tpu.concatenate %377, %378 in 0 : vector<1x32xf32>, vector<1x32xf32> -> vector<2x32xf32>
    %c0_168 = arith.constant 0 : index
    %c192_169 = arith.constant 192 : index
    %380 = vector.load %arg3[%c0_168, %c192_169] : memref<32x256xf32, #tpu.memory_space<vmem>>, vector<32x32xf32>
    %cst_170 = arith.constant dense<0.000000e+00> : vector<2x32xf32>
    %381 = tpu.matmul %379, %380, %cst_170 {dimension_numbers = #tpu.dot_dimension_numbers<[1], [0], [0], [1], [0, 0, 1, 1], [], []>} : vector<2x32xf32>, vector<32x32xf32>, vector<2x32xf32> -> vector<2x32xf32>
    %c8_171 = arith.constant 8 : index
    %c0_172 = arith.constant 0 : index
    %382 = vector.load %arg5[%c8_171, %c0_172] : memref<10x128xf32, #tpu.memory_space<vmem>>, vector<1x32xf32>
    %383 = vector.broadcast %382 : vector<1x32xf32> to vector<2x32xf32>
    %384 = arith.addf %381, %383 : vector<2x32xf32>
    %385 = math.tanh %384 : vector<2x32xf32>
    %c0_173 = arith.constant 0 : index
    %c224_174 = arith.constant 224 : index
    %386 = vector.load %arg3[%c0_173, %c224_174] : memref<32x256xf32, #tpu.memory_space<vmem>>, vector<32x32xf32>
    %cst_175 = arith.constant dense<0.000000e+00> : vector<2x32xf32>
    %387 = tpu.matmul %385, %386, %cst_175 {dimension_numbers = #tpu.dot_dimension_numbers<[1], [0], [0], [1], [0, 0, 1, 1], [], []>} : vector<2x32xf32>, vector<32x32xf32>, vector<2x32xf32> -> vector<2x32xf32>
    %c9_176 = arith.constant 9 : index
    %c0_177 = arith.constant 0 : index
    %388 = vector.load %arg5[%c9_176, %c0_177] : memref<10x128xf32, #tpu.memory_space<vmem>>, vector<1x32xf32>
    %389 = vector.broadcast %388 : vector<1x32xf32> to vector<2x32xf32>
    %390 = arith.addf %387, %389 : vector<2x32xf32>
    %391 = tpu.concatenate %385, %390 in 1 : vector<2x32xf32>, vector<2x32xf32> -> vector<2x64xf32>
    %c2_178 = arith.constant 2 : index
    %c0_179 = arith.constant 0 : index
    %c0_180 = arith.constant 0 : index
    %392 = vector.load %arg7[%c2_178, %c0_179, %c0_180] : memref<3x2x64xf32, #tpu.memory_space<vmem>>, vector<1x2x64xf32>
    %393 = vector.shape_cast %392 : vector<1x2x64xf32> to vector<2x64xf32>
    %394 = vector.shape_cast %391 : vector<2x64xf32> to vector<1x2x64xf32>
    tpu.vector_store %arg7[%c2_178, %c0_179, %c0_180], %394 {strides = array<i32>} : memref<3x2x64xf32, #tpu.memory_space<vmem>>, vector<1x2x64xf32>,
    %c0_181 = arith.constant 0 : index
    %c0_182 = arith.constant 0 : index
    %395 = vector.load %arg6[%c0_181, %c0_182] : memref<16x32xf32, #tpu.memory_space<vmem>>, vector<16x32xf32>
    tpu.vector_store %arg6[%c0_181, %c0_182], %376 {strides = array<i32>} : memref<16x32xf32, #tpu.memory_space<vmem>>, vector<16x32xf32>,
    return
  }
}

</mosaic_0001>

<bundles_post_ra>
// kernel: deebert_encoder_forward.1
= control target key start
LH: loop header
LB: loop body
LE: loop exit
PB: predicated region body
PF: predicated region fallthrough
CT: control target
= control target key end

     0   :  { %vm41_vm0 = vcmask 261120   ;;  %s5177_s0 = inlined_call_operand.vmem [shape: f32[16,32], index: 0, kind: input, shape index: {}]   ;;  %s5178_s1 = inlined_call_operand.vmem [shape: f32[32,16], index: 1, kind: input, shape index: {}]   ;;  %s5179_s2 = inlined_call_operand.vmem [shape: f32[3,32], index: 2, kind: input, shape index: {}]   ;;  %s5180_s3 = inlined_call_operand.vmem [shape: f32[32,256], index: 3, kind: input, shape index: {}]   ;;  %s5181_s4 = inlined_call_operand.vmem [shape: f32[64,32], index: 4, kind: input, shape index: {}]   ;;  %s5182_s5 = inlined_call_operand.vmem [shape: f32[10,128], index: 5, kind: input, shape index: {}]   ;;  %s5183_s6 = inlined_call_operand.hbm [shape: f32[16,32], index: 6, kind: output, shape index: {0}]   ;;  %s5184_s7 = inlined_call_operand.vmem [shape: f32[3,2,64], index: 7, kind: output, shape index: {1}]  }
   0x1   :  { %v4482_v0 = vld [vmem:[%s5180_s3] sm:$0xff]  ;;  %v4487_v1 = vld [vmem:[%s5180_s3 + $0x10] sm:$0xff] }
   0x2   :  { %v4492_v2 = vld [vmem:[%s5180_s3 + $0x20] sm:$0xff]  ;;  %v4496_v3 = vpack.c.bf16 %v4487_v1, %v4482_v0  ;;  %v4501_v4 = vld [vmem:[%s5180_s3 + $0x30] sm:$0xff] }
   0x3   :  { %v4506_v5 = vld [vmem:[%s5177_s0] sm:$0xff]  ;;  %v4510_v6 = vpack.c.bf16 %v4501_v4, %v4492_v2 }
   0x4   :  { %3631 = vmatprep.mubr.msk.f32.mxu0 %vm41_vm0, %v4506_v5 }
   0x5   :  { %13 = vsyncpa [#allocation3], 0  ;;  %3930 = vmatprep.subr.bf16.mxu0 %v4496_v3  ;;  %v4521_v7 = vld [vmem:[%s5177_s0 + $0x8] sm:$0xff]  ;;  %v4528_v8 = vld [vmem:[%s5182_s5] ss:$0 sm:$0xff]  ;;  %vm129_vm1 = vcmask 130048  }
   0x6   :  { %3932 = vmatpush3.bf16.msra.mxu0 %v4496_v3  ;;  %s4426_s15 = smov 112   ;;  %s4427_s0 = smov 96   ;;  %vm4544_vm2 = vmpackc.low %vm129_vm1, %vm129_vm1  ;;  %v4561_v26 = vld [vmem:[%s5178_s1 + $0x8] sm:$0xff]  ;;  %v4566_v29 = vld [vmem:[%s5178_s1] sm:$0xff]  ;;  %vm817_vm3 = vcmask 523264   ;;  %vm4434_vm4 = vmmov 0  }
   0x7   :  { %3934 = vmatprep.subr.bf16.mxu0 %v4510_v6  ;;  %s4428_s16 = smov 80   ;;  %v4574_v36 = vld [vmem:[%s5178_s1 + $0x10] sm:$0xff]  ;;  %v4580_v40 = vld [vmem:[%s5178_s1 + $0x18] sm:$0xff]  ;;  %s4429_s25 = smov 64   ;;  %vm944_vm5 = vcmask 1040384   ;;  %v4398_v18 = vld [vmem:[%s5178_s1 + $0x8] sm:$0xff] }
   0x8   :  { %s4430_s26 = smov 48   ;;  %s4431_s27 = smov 32   ;;  %vm1136_vm6 = vcmask 517120  }
   0x9   :  { %s4432_s28 = smov 16   ;;  %s4436_s10 = smov [#allocation2]  }
   0xa   :  { %3936 = vmatpush3.bf16.msra.mxu0 %v4510_v6  ;;  %s3345_s11 = sshll.u32 %s4436_s10, 4  ;;  %s3346_s11 = int_to_ptr.vmem [resolvable:$true] %s3345_s11 }
   0xb   :  { %s4402_s12 = scalar_lea.vmem %s3346_s11, 256  ;;  %p4407_p1 = scmp.lt.s32.totalorder %s3346_s11, %s3346_s11 }
   0xc   :  { %p4403_p0 = scmp.ne.s32.totalorder %s3346_s11, %s4402_s12  ;;  %p4408_p2 = scmp.lt.s32.totalorder %s4402_s12, %s4402_s12 }
   0xd   :  { %3632 = vmatmul.mubr.msk.f32.vlgmr.msra.gmra.mrb[0].mxu0 %vm41_vm0, %v4521_v7 }
   0xe   :  { %p4409_p3 = por %p4408_p2, %p4407_p1 }
  0x10   :  { %p4410_p4 = pnand %p4409_p3, %p4403_p0 }
  0xe0   :  { %v3633_v9 = vpop.f32.mrb[0].mxu0 }
  0xe1   :  { %v120_v10 = vadd.f32 %v3633_v9, %v4528_v8  ;;  %v114_v11 = vpop.f32.mrb[1].mxu0 }
  0xe2   :  { %v115_v12 = vadd.f32 %v4528_v8, %v114_v11 }
  0xe4   :  { %213 = vrot.lane.b32.xlu1 %v115_v12, %s4426_s15  ;;  %3638 = vmatprep.mubr.msk.f32.mxu1 %vm129_vm1, %v115_v12  ;;  %v4534_v13 = vpack.i.bf16 %v120_v10, %v115_v12 }
  0xe6   :  { %4159 = vrot.lane.b32.xlu0 %v4534_v13, %s4427_s0 }
  0xe8   :  { %215 = vrot.lane.b32.xlu1 %v120_v10, %s4426_s15 }
  0xea   :  { %4164 = vrot.lane.b32.xlu0 %v4534_v13, %s4428_s16 }
 0x156   :  { %v214_v14 = vpop.permute.xlu1 %213 }
 0x157   :  { %3645 = vmatprep.mubr.msk.f32.mxu0 %vm129_vm1, %v214_v14 }
 0x158   :  { %v4160_v15 = vpop.permute.xlu0 %4159 }
 0x159   :  { %v4162_v16 = vunpack.i.h.bf16 %v4160_v15  ;;  %v4161_v17 = vunpack.i.l.bf16 %v4160_v15 }
 0x15a   :  { %v216_v24 = vpop.permute.xlu1 %215 }
 0x15b   :  { %v3937_v19 = vpack.c.bf16 %v4162_v16, %v4161_v17 }
 0x15c   :  { %v4165_v20 = vpop.permute.xlu0 %4164 }
 0x15d   :  { %v4167_v21 = vunpack.i.h.bf16 %v4165_v20  ;;  %v4166_v22 = vunpack.i.l.bf16 %v4165_v20  ;;  %3939 = vmatprep.subr.msk.bf16.mxu1 %vm4544_vm2, %v3937_v19 }
 0x15e   :  { %3942 = vmatpush3.bf16.xpose.msk.msra.mxu1 %vm4544_vm2, %v3937_v19 }
 0x15f   :  { %v3943_v23 = vpack.c.bf16 %v4167_v21, %v4166_v22 }
 0x161   :  { %3945 = vmatprep.subr.msk.bf16.mxu0 %vm4544_vm2, %v3943_v23 }
 0x162   :  { %3948 = vmatpush3.bf16.xpose.msk.msra.mxu0 %vm4544_vm2, %v3943_v23 }
 0x165   :  { %3639 = vmatmul.mubr.msk.f32.vlgmr.msra.gmra.mrb[0].mxu1 %vm129_vm1, %v120_v10  ;;  %v4596_v10 = vpack.i.bf16 %v4487_v1, %v4482_v0 }
 0x169   :  { %3646 = vmatmul.mubr.msk.f32.vlgmr.msra.gmra.mrb[2].mxu0 %vm129_vm1, %v216_v24 }
 0x238   :  { %v3640_v25 = vpop.f32.mrb[0].mxu1 }
 0x239   :  { %v305_v27 = vmul.f32 0.25, %v3640_v25  ;;  %v204_v28 = vpop.f32.mrb[1].mxu1 }
 0x23a   :  { %v304_v30 = vmul.f32 0.25, %v204_v28 }
 0x23b   :  { %v309_v31 = vadd.f32 %v305_v27, %v4561_v26 }
 0x23c   :  { %v3647_v32 = vpop.f32.mrb[2].mxu0  ;;  %v308_v33 = vadd.f32 %v304_v30, %v4566_v29 }
 0x23d   :  { %v295_v34 = vpop.f32.mrb[3].mxu0  ;;  %v315_v35 = vsel %vm129_vm1, %v309_v31, -inf  ;;  %v307_v37 = vmul.f32 0.25, %v3647_v32  ;;  %v4606_v32 = vpack.i.bf16 %v4501_v4, %v4492_v2  ;;  %v3375_v4 = vld [vmem:[%s5179_s2] ss:$0 sm:$0xff] }
 0x23e   :  { %v306_v38 = vmul.f32 0.25, %v295_v34  ;;  %316 = vmax.xlane.f32.xlu1 %v315_v35  ;;  %v312_v39 = vsel %vm129_vm1, %v308_v33, -inf }
 0x23f   :  { %313 = vmax.xlane.f32.xlu0 %v312_v39  ;;  %v311_v43 = vadd.f32 %v307_v37, %v4580_v40 }
 0x240   :  { %v310_v41 = vadd.f32 %v306_v38, %v4574_v36 }
 0x241   :  { %v321_v44 = vsel %vm129_vm1, %v311_v43, -inf }
 0x242   :  { %v318_v42 = vsel %vm129_vm1, %v310_v41, -inf }
 0x243   :  { %319 = vmax.xlane.f32.xlu0 %v318_v42 }
 0x247   :  { %322 = vmax.xlane.f32.xlu0 %v321_v44 }
 0x2cb   :  { %v317_v45 = vpop.xlane.xlu1 %316 }
 0x2cc   :  { %v325_v46 = vsub.f32 %v309_v31, %v317_v45  ;;  %v314_v47 = vpop.xlane.xlu0 %313 }
 0x2cd   :  { %v324_v48 = vsub.f32 %v308_v33, %v314_v47 }
 0x2ce   :  { %v330_v49 = vmul.f32 1.442695, %v325_v46 }
 0x2cf   :  { %v328_v50 = vmul.f32 1.442695, %v324_v48 }
 0x2d0   :  { %4308 = vpow2.f32 %v330_v49  ;;  %v320_v51 = vpop.xlane.xlu0 %319 }
 0x2d1   :  { %4310 = vpow2.f32 %v328_v50  ;;  %v326_v52 = vsub.f32 %v310_v41, %v320_v51 }
 0x2d3   :  { %v332_v53 = vmul.f32 1.442695, %v326_v52  ;;  %v4622_v52 = vld [vmem:[%s5182_s5 + $0x1] ss:$0 sm:$0xff] }
 0x2d4   :  { %v323_v54 = vpop.xlane.xlu0 %322 }
 0x2d5   :  { %4312 = vpow2.f32 %v332_v53  ;;  %v327_v55 = vsub.f32 %v311_v43, %v323_v54 }
 0x2d7   :  { %v334_v56 = vmul.f32 1.442695, %v327_v55 }
 0x2d9   :  { %4314 = vpow2.f32 %v334_v56 }
 0x2da   :  { %v4309_v57 = vpop.eup %4308 }
 0x2db   :  { %v4311_v58 = vpop.eup %4310  ;;  %v339_v59 = vsel %vm129_vm1, %v4309_v57, 0.0 }
 0x2dc   :  { %340 = vadd.xlane.f32.xlu0 %v339_v59  ;;  %v336_v60 = vsel %vm129_vm1, %v4311_v58, 0.0 }
 0x2dd   :  { %337 = vadd.xlane.f32.xlu1 %v336_v60 }
 0x2df   :  { %v4313_v61 = vpop.eup %4312 }
 0x2e0   :  { %v342_v62 = vsel %vm129_vm1, %v4313_v61, 0.0 }
 0x2e1   :  { %343 = vadd.xlane.f32.xlu1 %v342_v62 }
 0x2e3   :  { %v4315_v63 = vpop.eup %4314 }
 0x2e4   :  { %v345_v9 = vsel %vm129_vm1, %v4315_v63, 0.0 }
 0x2e5   :  { %346 = vadd.xlane.f32.xlu0 %v345_v9 }
 0x2f2   :  { %4169 = vrot.lane.b32.xlu1 %v4534_v13, %s4429_s25 }
 0x2f6   :  { %4179 = vrot.lane.b32.xlu1 %v4596_v10, %s4431_s27 }
 0x2fa   :  { %4184 = vrot.lane.b32.xlu1 %v4606_v32, %s4431_s27 }
 0x2fb   :  { %4174 = vrot.lane.b32.xlu0 %v4534_v13, %s4430_s26 }
 0x369   :  { %v341_v11 = vpop.xlane.xlu0 %340 }
 0x36a   :  { %v338_v12 = vpop.xlane.xlu1 %337 }
 0x36b   :  { %4316 = vrcp.f32 %v338_v12 }
 0x36c   :  { %4318 = vrcp.f32 %v341_v11 }
 0x36e   :  { %v344_v14 = vpop.xlane.xlu1 %343 }
 0x36f   :  { %4320 = vrcp.f32 %v344_v14 }
 0x372   :  { %v4170_v15 = vpop.permute.xlu1 %4169  ;;  %v347_v16 = vpop.xlane.xlu0 %346 }
 0x373   :  { %v4172_v17 = vunpack.i.h.bf16 %v4170_v15  ;;  %v4171_v19 = vunpack.i.l.bf16 %v4170_v15  ;;  %4322 = vrcp.f32 %v347_v16 }
 0x375   :  { %v4317_v13 = vpop.eup %4316  ;;  %v3949_v20 = vpack.c.bf16 %v4172_v17, %v4171_v19  ;;  %v4640_v17 = vld [vmem:[%s5180_s3 + $0x18] sm:$0xff] }
 0x376   :  { %v4319_v21 = vpop.eup %4318  ;;  %v4175_v0 = vpop.permute.xlu0 %4174  ;;  %v352_v1 = vmul.f32 %v4317_v13, %v4311_v58  ;;  %v4651_v13 = vld [vmem:[%s5180_s3 + $0x28] sm:$0xff] }
 0x377   :  { %v4177_v22 = vunpack.i.h.bf16 %v4175_v0  ;;  %v4176_v23 = vunpack.i.l.bf16 %v4175_v0  ;;  %3950 = vmatprep.subr.bf16.mxu1 %v3949_v20  ;;  %v353_v25 = vmul.f32 %v4319_v21, %v4309_v57  ;;  %v4180_v33 = vpop.permute.xlu1 %4179 }
 0x378   :  { %3952 = vmatpush3.bf16.msra.mxu1 %v3949_v20  ;;  %3652 = vmatprep.mubr.msk.f32.mxu1 %vm129_vm1, %v352_v1  ;;  %v4182_v34 = vunpack.i.h.bf16 %v4180_v33  ;;  %v4181_v35 = vunpack.i.l.bf16 %v4180_v33  ;;  %v4656_v20 = vld [vmem:[%s5180_s3 + $0x38] sm:$0xff] }
 0x379   :  { %v4321_v24 = vpop.eup %4320  ;;  %v3953_v27 = vpack.c.bf16 %v4177_v22, %v4176_v23  ;;  %v4660_v21 = vpack.c.bf16 %v4656_v20, %v4651_v13 }
 0x37a   :  { %v354_v28 = vmul.f32 %v4321_v24, %v4313_v61  ;;  %v3957_v37 = vpack.c.bf16 %v4182_v34, %v4181_v35 }
 0x37b   :  { %3653 = vmatmul.mubr.msk.f32.vlgmr.msra.gmra.mrb[2].mxu1 %vm129_vm1, %v353_v25  ;;  %3954 = vmatprep.subr.bf16.mxu1 %v3953_v27  ;;  %v4185_v38 = vpop.permute.xlu1 %4184 }
 0x37c   :  { %3956 = vmatpush3.bf16.msra.mxu1 %v3953_v27  ;;  %3659 = vmatprep.mubr.msk.f32.mxu1 %vm129_vm1, %v354_v28  ;;  %v4187_v39 = vunpack.i.h.bf16 %v4185_v38  ;;  %v4186_v41 = vunpack.i.l.bf16 %v4185_v38  ;;  %v4667_v28 = vld [vmem:[%s5182_s5 + $0x2] ss:$0 sm:$0xff] }
 0x37d   :  { %v4323_v30 = vpop.eup %4322  ;;  %3958 = vmatprep.subr.bf16.mxu0 %v3957_v37 }
 0x37e   :  { %v355_v31 = vmul.f32 %v4323_v30, %v4315_v63  ;;  %3960 = vmatpush3.bf16.msra.mxu0 %v3957_v37  ;;  %v3961_v42 = vpack.c.bf16 %v4187_v39, %v4186_v41  ;;  %v804_v41 = vld [vmem:[%s5181_s4] sm:$0xff] }
 0x380   :  { %3660 = vmatmul.mubr.msk.f32.vlgmr.msra.gmra.mrb[4].mxu1 %vm129_vm1, %v355_v31  ;;  %3962 = vmatprep.subr.bf16.mxu0 %v3961_v42  ;;  %v4672_v31 = vld [vmem:[%s5182_s5 + $0x3] ss:$0 sm:$0xff] }
 0x382   :  { %3964 = vmatpush3.bf16.msra.mxu0 %v3961_v42  ;;  %v805_v42 = vld [vmem:[%s5181_s4 + $0x8] sm:$0xff] }
 0x44e   :  { %v3654_v43 = vpop.f32.mrb[2].mxu1 }
 0x44f   :  { %v434_v44 = vpop.f32.mrb[3].mxu1 }
 0x453   :  { %v3661_v45 = vpop.f32.mrb[4].mxu1 }
 0x454   :  { %535 = vrot.lane.b32.xlu1 %v3661_v45, %s4432_s28  ;;  %v521_v2 = vpop.f32.mrb[5].mxu1  ;;  %v807_v45 = vld [vmem:[%s5181_s4 + $0x18] sm:$0xff] }
 0x455   :  { %533 = vrot.lane.b32.xlu0 %v521_v2, %s4432_s28  ;;  %v808_v2 = vld [vmem:[%s5181_s4 + $0x20] sm:$0xff] }
 0x4c6   :  { %v536_v46 = vpop.permute.xlu1 %535 }
 0x4c7   :  { %v540_v47 = vsel %vm129_vm1, %v3654_v43, %v536_v46  ;;  %v534_v48 = vpop.permute.xlu0 %533  ;;  %v4689_v43 = vpack.c.bf16 %v805_v42, %v804_v41  ;;  %v809_v46 = vld [vmem:[%s5181_s4 + $0x28] sm:$0xff] }
 0x4c8   :  { %v539_v49 = vsel %vm129_vm1, %v434_v44, %v534_v48  ;;  %v546_v51 = vmul.f32 %v3375_v4, %v540_v47  ;;  %v806_v44 = vld [vmem:[%s5181_s4 + $0x10] sm:$0xff]  ;;  %v4708_v47 = vpack.c.bf16 %v809_v46, %v808_v2 }
 0x4c9   :  { %v545_v50 = vmul.f32 %v3375_v4, %v539_v49  ;;  %3974 = vmatprep.subr.bf16.mxu0 %v4689_v43  ;;  %v4701_v4 = vpack.c.bf16 %v807_v45, %v806_v44  ;;  %v810_v48 = vld [vmem:[%s5181_s4 + $0x30] sm:$0xff]  ;;  %v811_v49 = vld [vmem:[%s5181_s4 + $0x38] sm:$0xff] }
 0x4cb   :  { %3670 = vmatprep.mubr.msk.f32.mxu0 %vm41_vm0, %v545_v50  ;;  %v4718_v50 = vpack.c.bf16 %v811_v49, %v810_v48 }
 0x4cc   :  { %3671 = vmatmul.mubr.msk.f32.vlgmr.msra.gmra.mrb[4].mxu0 %vm41_vm0, %v546_v51  ;;  %v4727_v51 = vld [vmem:[%s5182_s5 + $0x4] ss:$0 sm:$0xff] }
 0x4cd   :  { %3976 = vmatpush3.bf16.msra.mxu0 %v4689_v43 }
 0x4ce   :  { %3978 = vmatprep.subr.bf16.mxu0 %v4701_v4 }
 0x4d1   :  { %3980 = vmatpush3.bf16.msra.mxu0 %v4701_v4 }
 0x4d2   :  { %3982 = vmatprep.subr.bf16.mxu0 %v4708_v47 }
 0x4d5   :  { %3984 = vmatpush3.bf16.msra.mxu0 %v4708_v47 }
 0x4d6   :  { %3986 = vmatprep.subr.bf16.mxu0 %v4718_v50 }
 0x4d9   :  { %3988 = vmatpush3.bf16.msra.mxu0 %v4718_v50 }
 0x4da   :  { %4002 = vmatprep.subr.bf16.mxu0 %v4496_v3 }
 0x59f   :  { %v3672_v53 = vpop.f32.mrb[4].mxu0 }
 0x5a0   :  { %v650_v54 = vadd.f32 %v3672_v53, %v4622_v52  ;;  %v644_v55 = vpop.f32.mrb[5].mxu0 }
 0x5a1   :  { %v645_v56 = vadd.f32 %v4622_v52, %v644_v55 }
 0x5a2   :  { %v654_v57 = vadd.f32 %v650_v54, %v4521_v7 }
 0x5a3   :  { %v653_v58 = vadd.f32 %v645_v56, %v4506_v5  ;;  %v4635_v5 = vld [vmem:[%s5180_s3 + $0x8] sm:$0xff] }
 0x5a4   :  { %v660_v59 = vsel %vm41_vm0, %v654_v57, 0.0  ;;  %v4644_v19 = vpack.c.bf16 %v4640_v17, %v4635_v5 }
 0x5a5   :  { %661 = vadd.xlane.f32.xlu1 %v660_v59  ;;  %v657_v60 = vsel %vm41_vm0, %v653_v58, 0.0 }
 0x5a6   :  { %658 = vadd.xlane.f32.xlu0 %v657_v60  ;;  %3966 = vmatprep.subr.bf16.mxu1 %v4644_v19 }
 0x5a7   :  { %3968 = vmatpush3.bf16.msra.mxu1 %v4644_v19 }
 0x5a8   :  { %3970 = vmatprep.subr.bf16.mxu1 %v4660_v21 }
 0x5ab   :  { %3972 = vmatpush3.bf16.msra.mxu1 %v4660_v21 }
 0x632   :  { %v662_v61 = vpop.xlane.xlu1 %661 }
 0x633   :  { %v665_v62 = vmul.f32 0.03125, %v662_v61  ;;  %v659_v63 = vpop.xlane.xlu0 %658 }
 0x634   :  { %v664_v9 = vmul.f32 0.03125, %v659_v63 }
 0x635   :  { %v667_v11 = vsub.f32 %v654_v57, %v665_v62 }
 0x636   :  { %v666_v12 = vsub.f32 %v653_v58, %v664_v9 }
 0x637   :  { %v669_v16 = vmul.f32 %v667_v11, %v667_v11 }
 0x638   :  { %v668_v14 = vmul.f32 %v666_v12, %v666_v12 }
 0x639   :  { %v673_v7 = vsel %vm41_vm0, %v669_v16, 0.0 }
 0x63a   :  { %v670_v15 = vsel %vm41_vm0, %v668_v14, 0.0 }
 0x63b   :  { %671 = vadd.xlane.f32.xlu0 %v670_v15 }
 0x63f   :  { %674 = vadd.xlane.f32.xlu0 %v673_v7 }
 0x6c8   :  { %v672_v0 = vpop.xlane.xlu0 %671 }
 0x6c9   :  { %v676_v1 = vmul.f32 0.03125, %v672_v0 }
 0x6cb   :  { %v678_v22 = vadd.f32 1e-12, %v676_v1 }
 0x6cc   :  { %v675_v23 = vpop.xlane.xlu0 %674 }
 0x6cd   :  { %4324 = vrsqrt.f32 %v678_v22  ;;  %v677_v24 = vmul.f32 0.03125, %v675_v23 }
 0x6cf   :  { %v679_v25 = vadd.f32 1e-12, %v677_v24  ;;  %v4739_v24 = vld [vmem:[%s5182_s5 + $0x5] ss:$0 sm:$0xff] }
 0x6d1   :  { %4326 = vrsqrt.f32 %v679_v25 }
 0x6d7   :  { %v4325_v27 = vpop.eup %4324 }
 0x6d8   :  { %v682_v30 = vmul.f32 %v4325_v27, %v666_v12 }
 0x6da   :  { %v688_v33 = vmul.f32 %v4667_v28, %v682_v30 }
 0x6db   :  { %v4327_v34 = vpop.eup %4326 }
 0x6dc   :  { %v683_v35 = vmul.f32 %v4327_v34, %v667_v11  ;;  %v4676_v37 = vadd.f32 %v4672_v31, %v688_v33 }
 0x6de   :  { %v689_v38 = vmul.f32 %v4667_v28, %v683_v35  ;;  %3681 = vmatprep.mubr.msk.f32.mxu1 %vm41_vm0, %v4676_v37 }
 0x6e0   :  { %v695_v39 = vadd.f32 %v4672_v31, %v689_v38 }
 0x6e2   :  { %3682 = vmatmul.mubr.msk.f32.vlgmr.msra.gmra.mrb[6].mxu1 %vm41_vm0, %v695_v39 }
 0x7b5   :  { %v3683_v53 = vpop.f32.mrb[6].mxu1 }
 0x7b6   :  { %v783_v54 = vadd.f32 %v3683_v53, %v4727_v51  ;;  %v777_v55 = vpop.f32.mrb[7].mxu1  ;;  %v4756_v53 = vpack.i.bf16 %v4656_v20, %v4651_v13 }
 0x7b7   :  { %v778_v56 = vadd.f32 %v4727_v51, %v777_v55 }
 0x7b8   :  { %v789_v57 = vmul.f32 0.044715, %v783_v54  ;;  %v787_v1 = vmul.f32 0.5, %v783_v54 }
 0x7b9   :  { %v788_v58 = vmul.f32 0.044715, %v778_v56  ;;  %v786_v7 = vmul.f32 0.5, %v778_v56 }
 0x7ba   :  { %v791_v59 = vmul.f32 %v789_v57, %v783_v54 }
 0x7bb   :  { %v790_v60 = vmul.f32 %v788_v58, %v778_v56 }
 0x7bc   :  { %v793_v61 = vmul.f32 %v791_v59, %v783_v54 }
 0x7bd   :  { %v792_v62 = vmul.f32 %v790_v60, %v778_v56 }
 0x7be   :  { %v795_v63 = vadd.f32 %v793_v61, %v783_v54  ;;  %v4433_v54 = vmov 0.0|0.0  }
 0x7bf   :  { %v794_v9 = vadd.f32 %v792_v62, %v778_v56  ;;  %3989 = vmatprep.subr.bf16.mxu1 %v4433_v54 }
 0x7c0   :  { %v797_v11 = vmul.f32 0.7978846, %v795_v63 }
 0x7c1   :  { %v796_v12 = vmul.f32 0.7978846, %v794_v9 }
 0x7c2   :  { %4328 = vtanh.f32 %v797_v11 }
 0x7c3   :  { %4330 = vtanh.f32 %v796_v12 }
 0x7cc   :  { %v4329_v14 = vpop.eup %4328 }
 0x7cd   :  { %v4331_v15 = vpop.eup %4330  ;;  %v801_v16 = vadd.f32 1.0, %v4329_v14  ;;  %v4771_v14 = vld [vmem:[%s5182_s5 + $0x6] ss:$0 sm:$0xff] }
 0x7ce   :  { %v800_v0 = vadd.f32 1.0, %v4331_v15 }
 0x7cf   :  { %v803_v23 = vmul.f32 %v801_v16, %v787_v1 }
 0x7d0   :  { %v802_v22 = vmul.f32 %v800_v0, %v786_v7  ;;  %v4777_v7 = vld [vmem:[%s5182_s5 + $0x7] ss:$0 sm:$0xff] }
 0x7d2   :  { %3700 = vmatprep.mubr.msk.f32.mxu0 %vm817_vm3, %v802_v22 }
 0x7d3   :  { %3701 = vmatmul.mubr.msk.f32.vlgmr.msra.gmra.mrb[6].mxu0 %vm817_vm3, %v803_v23 }
 0x7d4   :  { %4004 = vmatpush3.bf16.msra.mxu0 %v4496_v3 }
 0x7d5   :  { %4006 = vmatprep.subr.bf16.mxu0 %v4510_v6 }
 0x7d8   :  { %4008 = vmatpush3.bf16.msra.mxu0 %v4510_v6 }
 0x8a6   :  { %v3702_v25 = vpop.f32.mrb[6].mxu0 }
 0x8a7   :  { %v896_v27 = vadd.f32 %v3702_v25, %v4739_v24  ;;  %v890_v30 = vpop.f32.mrb[7].mxu0 }
 0x8a8   :  { %v891_v33 = vadd.f32 %v4739_v24, %v890_v30 }
 0x8a9   :  { %v900_v34 = vadd.f32 %v896_v27, %v695_v39 }
 0x8aa   :  { %v899_v35 = vadd.f32 %v891_v33, %v4676_v37  ;;  %v4750_v37 = vpack.i.bf16 %v4640_v17, %v4635_v5  ;;  %v4435_v5 = vmov 0.0  }
 0x8ab   :  { %v906_v3 = vsel %vm41_vm0, %v900_v34, 0.0  ;;  %3711 = vmatprep.mubr.msk.f32.mxu1 %vm4434_vm4, %v4435_v5 }
 0x8ac   :  { %907 = vadd.xlane.f32.xlu0 %v906_v3  ;;  %v903_v38 = vsel %vm41_vm0, %v899_v35, 0.0 }
 0x8ad   :  { %904 = vadd.xlane.f32.xlu1 %v903_v38 }
 0x939   :  { %v908_v6 = vpop.xlane.xlu0 %907 }
 0x93a   :  { %v910_v41 = vmul.f32 0.03125, %v908_v6  ;;  %v905_v42 = vpop.xlane.xlu1 %904 }
 0x93b   :  { %v909_v44 = vmul.f32 0.03125, %v905_v42 }
 0x93c   :  { %v912_v45 = vsub.f32 %v900_v34, %v910_v41 }
 0x93d   :  { %v911_v2 = vsub.f32 %v899_v35, %v909_v44  ;;  %v4801_v44 = vld [vmem:[%s5182_s5 + $0x8] ss:$0 sm:$0xff] }
 0x93e   :  { %v914_v46 = vmul.f32 %v912_v45, %v912_v45 }
 0x93f   :  { %v913_v48 = vmul.f32 %v911_v2, %v911_v2 }
 0x940   :  { %v918_v49 = vsel %vm41_vm0, %v914_v46, 0.0 }
 0x941   :  { %919 = vadd.xlane.f32.xlu0 %v918_v49  ;;  %v915_v39 = vsel %vm41_vm0, %v913_v48, 0.0 }
 0x942   :  { %916 = vadd.xlane.f32.xlu1 %v915_v39 }
 0x953   :  { %4189 = vrot.lane.b32.xlu1 %v4750_v37, %s4429_s25 }
 0x957   :  { %4194 = vrot.lane.b32.xlu0 %v4756_v53, %s4429_s25  ;;  %4199 = vrot.lane.b32.xlu1 %v4750_v37, %s4431_s27 }
 0x95b   :  { %4204 = vrot.lane.b32.xlu1 %v4756_v53, %s4431_s27 }
 0x9ce   :  { %v920_v17 = vpop.xlane.xlu0 %919 }
 0x9cf   :  { %v922_v13 = vmul.f32 0.03125, %v920_v17  ;;  %v917_v20 = vpop.xlane.xlu1 %916 }
 0x9d0   :  { %v921_v55 = vmul.f32 0.03125, %v917_v20 }
 0x9d1   :  { %v924_v56 = vadd.f32 1e-12, %v922_v13 }
 0x9d2   :  { %v923_v57 = vadd.f32 1e-12, %v921_v55  ;;  %v4195_v58 = vpop.permute.xlu0 %4194 }
 0x9d3   :  { %4332 = vrsqrt.f32 %v924_v56  ;;  %v4190_v59 = vpop.permute.xlu1 %4189  ;;  %v4197_v60 = vunpack.i.h.bf16 %v4195_v58  ;;  %v4196_v63 = vunpack.i.l.bf16 %v4195_v58 }
 0x9d4   :  { %4334 = vrsqrt.f32 %v923_v57  ;;  %v4192_v61 = vunpack.i.h.bf16 %v4190_v59  ;;  %v4191_v62 = vunpack.i.l.bf16 %v4190_v59 }
 0x9d5   :  { %v3993_v11 = vpack.c.bf16 %v4197_v60, %v4196_v63 }
 0x9d6   :  { %v3990_v9 = vpack.c.bf16 %v4192_v61, %v4191_v62 }
 0x9d7   :  { %v4200_v33 = vpop.permute.xlu1 %4199 }
 0x9d8   :  { %3991 = vmatpush3.bf16.msra.mxu1 %v3990_v9  ;;  %v4202_v34 = vunpack.i.h.bf16 %v4200_v33  ;;  %v4201_v35 = vunpack.i.l.bf16 %v4200_v33 }
 0x9d9   :  { %3992 = vmatprep.subr.bf16.mxu1 %v4433_v54 }
 0x9da   :  { %v3996_v3 = vpack.c.bf16 %v4202_v34, %v4201_v35 }
 0x9db   :  { %v4205_v38 = vpop.permute.xlu1 %4204 }
 0x9dc   :  { %3994 = vmatpush3.bf16.msra.mxu1 %v3993_v11  ;;  %v4207_v6 = vunpack.i.h.bf16 %v4205_v38  ;;  %v4206_v41 = vunpack.i.l.bf16 %v4205_v38 }
 0x9dd   :  { %v4333_v12 = vpop.eup %4332  ;;  %3995 = vmatprep.subr.bf16.mxu1 %v4433_v54 }
 0x9de   :  { %v4335_v15 = vpop.eup %4334  ;;  %v928_v16 = vmul.f32 %v4333_v12, %v912_v45  ;;  %v3999_v42 = vpack.c.bf16 %v4207_v6, %v4206_v41 }
 0x9df   :  { %v927_v0 = vmul.f32 %v4335_v15, %v911_v2 }
 0x9e0   :  { %v934_v1 = vmul.f32 %v4771_v14, %v928_v16 }
 0x9e1   :  { %v933_v22 = vmul.f32 %v4771_v14, %v927_v0 }
 0x9e2   :  { %v4782_v23 = vadd.f32 %v4777_v7, %v934_v1 }
 0x9e3   :  { %v4785_v25 = vadd.f32 %v4777_v7, %v933_v22 }
 0x9e4   :  { %v942_v27 = vrot.slane %v4782_v23, 7 }
 0x9e5   :  { %3733 = vmatprep.mubr.msk.f32.mxu0 %vm41_vm0, %v4785_v25 }
 0x9e6   :  { %3734 = vmatmul.mubr.msk.f32.vlgmr.msra.gmra.mrb[8].mxu0 %vm41_vm0, %v4782_v23  ;;  %v945_v30 = vsel %vm944_vm5, %v4785_v25, %v942_v27 }
 0x9e7   :  { %3712 = vmatmul.mubr.msk.f32.vlgmr.msra.gmra.mrb[8].mxu1 %vm41_vm0, %v945_v30 }
 0x9e8   :  { %3722 = vmatprep.mubr.msk.f32.mxu1 %vm4434_vm4, %v4435_v5  ;;  %3997 = vmatpush3.bf16.msra.mxu1 %v3996_v3 }
 0x9e9   :  { %3998 = vmatprep.subr.bf16.mxu1 %v4433_v54 }
 0x9ec   :  { %4000 = vmatpush3.bf16.msra.mxu1 %v3999_v42 }
 0xab9   :  { %v3735_v45 = vpop.f32.mrb[8].mxu0 }
 0xaba   :  { %v1224_v2 = vadd.f32 %v3735_v45, %v4528_v8  ;;  %v1036_v46 = vpop.f32.mrb[8].mxu1  ;;  %v1218_v48 = vpop.f32.mrb[9].mxu0 }
 0xabb   :  { %v1037_v49 = vadd.f32 %v4801_v44, %v1036_v46  ;;  %v1219_v39 = vadd.f32 %v4528_v8, %v1218_v48  ;;  %v3713_v17 = vpop.f32.mrb[9].mxu1 }
 0xabd   :  { %4336 = vtanh.f32 %v1037_v49  ;;  %v4806_v13 = vpack.i.bf16 %v1224_v2, %v1219_v39 }
 0xabf   :  { %4214 = vrot.lane.b32.xlu1 %v4806_v13, %s4428_s16  ;;  %4209 = vrot.lane.b32.xlu0 %v4806_v13, %s4427_s0 }
 0xac3   :  { %1318 = vrot.lane.b32.xlu1 %v1224_v2, %s4426_s15  ;;  %1316 = vrot.lane.b32.xlu0 %v1219_v39, %s4426_s15 }
 0xac7   :  { %v4814_v20 = vpop.eup %4336 }
 0xac8   :  { %3723 = vmatmul.mubr.msk.f32.vlgmr.msra.gmra.mrb[10].mxu1 %vm41_vm0, %v4814_v20 }
 0xac9   :  { %3740 = vmatprep.mubr.msk.f32.mxu1 %vm129_vm1, %v1219_v39 }
 0xb31   :  { %v4210_v8 = vpop.permute.xlu0 %4209  ;;  %v4215_v55 = vpop.permute.xlu1 %4214 }
 0xb32   :  { %v4212_v56 = vunpack.i.h.bf16 %v4210_v8  ;;  %v4211_v57 = vunpack.i.l.bf16 %v4210_v8  ;;  %v4217_v58 = vunpack.i.h.bf16 %v4215_v55  ;;  %v4216_v59 = vunpack.i.l.bf16 %v4215_v55 }
 0xb34   :  { %v4009_v60 = vpack.c.bf16 %v4212_v56, %v4211_v57  ;;  %v4015_v61 = vpack.c.bf16 %v4217_v58, %v4216_v59 }
 0xb35   :  { %v1317_v62 = vpop.permute.xlu0 %1316  ;;  %v1319_v63 = vpop.permute.xlu1 %1318 }
 0xb36   :  { %4011 = vmatprep.subr.msk.bf16.mxu1 %vm4544_vm2, %v4009_v60  ;;  %4017 = vmatprep.subr.msk.bf16.mxu0 %vm4544_vm2, %v4015_v61 }
 0xb37   :  { %3747 = vmatprep.mubr.msk.f32.mxu0 %vm129_vm1, %v1317_v62  ;;  %4014 = vmatpush3.bf16.xpose.msk.msra.mxu1 %vm4544_vm2, %v4009_v60 }
 0xb38   :  { %4020 = vmatpush3.bf16.xpose.msk.msra.mxu0 %vm4544_vm2, %v4015_v61 }
 0xb3e   :  { %3741 = vmatmul.mubr.msk.f32.vlgmr.msra.gmra.mrb[12].mxu1 %vm129_vm1, %v1224_v2 }
 0xb3f   :  { %3748 = vmatmul.mubr.msk.f32.vlgmr.msra.gmra.mrb[10].mxu0 %vm129_vm1, %v1319_v63 }
 0xb9b   :  { %v4830_v9 = vpop.f32.mrb[10].mxu1 }
 0xb9c   :  { %v3724_v11 = vpop.f32.mrb[11].mxu1 }
 0xc11   :  { %v3742_v12 = vpop.f32.mrb[12].mxu1 }
 0xc12   :  { %v1408_v15 = vmul.f32 0.25, %v3742_v12  ;;  %v3749_v16 = vpop.f32.mrb[10].mxu0  ;;  %v1307_v0 = vpop.f32.mrb[13].mxu1 }
 0xc13   :  { %v1407_v1 = vmul.f32 0.25, %v1307_v0  ;;  %v1398_v22 = vpop.f32.mrb[11].mxu0  ;;  %v1410_v35 = vmul.f32 0.25, %v3749_v16 }
 0xc14   :  { %v1409_v27 = vmul.f32 0.25, %v1398_v22  ;;  %v1412_v30 = vadd.f32 %v1408_v15, %v4561_v26 }
 0xc15   :  { %v1411_v33 = vadd.f32 %v1407_v1, %v4566_v29  ;;  %v1414_v41 = vadd.f32 %v1410_v35, %v4580_v40 }
 0xc16   :  { %v1418_v34 = vsel %vm129_vm1, %v1412_v30, -inf  ;;  %v1413_v38 = vadd.f32 %v1409_v27, %v4574_v36 }
 0xc17   :  { %1419 = vmax.xlane.f32.xlu1 %v1418_v34  ;;  %v1415_v3 = vsel %vm129_vm1, %v1411_v33, -inf  ;;  %v1424_v42 = vsel %vm129_vm1, %v1414_v41, -inf }
 0xc18   :  { %1416 = vmax.xlane.f32.xlu0 %v1415_v3  ;;  %v1421_v6 = vsel %vm129_vm1, %v1413_v38, -inf }
 0xc1c   :  { %1422 = vmax.xlane.f32.xlu0 %v1421_v6 }
 0xc20   :  { %1425 = vmax.xlane.f32.xlu0 %v1424_v42 }
 0xca4   :  { %v1420_v26 = vpop.xlane.xlu1 %1419 }
 0xca5   :  { %v1428_v45 = vsub.f32 %v1412_v30, %v1420_v26  ;;  %v1417_v29 = vpop.xlane.xlu0 %1416 }
 0xca6   :  { %v1427_v2 = vsub.f32 %v1411_v33, %v1417_v29 }
 0xca7   :  { %v1433_v46 = vmul.f32 1.442695, %v1428_v45 }
 0xca8   :  { %v1431_v48 = vmul.f32 1.442695, %v1427_v2 }
 0xca9   :  { %4338 = vpow2.f32 %v1433_v46  ;;  %v1423_v49 = vpop.xlane.xlu0 %1422 }
 0xcaa   :  { %4340 = vpow2.f32 %v1431_v48  ;;  %v1429_v39 = vsub.f32 %v1413_v38, %v1423_v49 }
 0xcac   :  { %v1435_v36 = vmul.f32 1.442695, %v1429_v39 }
 0xcad   :  { %v1426_v17 = vpop.xlane.xlu0 %1425 }
 0xcae   :  { %4342 = vpow2.f32 %v1435_v36  ;;  %v1430_v8 = vsub.f32 %v1414_v41, %v1426_v17  ;;  %v3408_v17 = vld [vmem:[%s5179_s2 + $0x1] ss:$0 sm:$0xff] }
 0xcb0   :  { %v1437_v55 = vmul.f32 1.442695, %v1430_v8 }
 0xcb2   :  { %4344 = vpow2.f32 %v1437_v55 }
 0xcb3   :  { %v4339_v40 = vpop.eup %4338 }
 0xcb4   :  { %v4341_v56 = vpop.eup %4340  ;;  %v1442_v57 = vsel %vm129_vm1, %v4339_v40, 0.0 }
 0xcb5   :  { %1443 = vadd.xlane.f32.xlu0 %v1442_v57  ;;  %v1439_v58 = vsel %vm129_vm1, %v4341_v56, 0.0 }
 0xcb6   :  { %1440 = vadd.xlane.f32.xlu1 %v1439_v58 }
 0xcb8   :  { %v4343_v59 = vpop.eup %4342 }
 0xcb9   :  { %v1445_v60 = vsel %vm129_vm1, %v4343_v59, 0.0 }
 0xcba   :  { %1446 = vadd.xlane.f32.xlu1 %v1445_v60 }
 0xcbc   :  { %v4345_v61 = vpop.eup %4344 }
 0xcbd   :  { %v1448_v62 = vsel %vm129_vm1, %v4345_v61, 0.0 }
 0xcbe   :  { %1449 = vadd.xlane.f32.xlu0 %v1448_v62 }
 0xccb   :  { %4219 = vrot.lane.b32.xlu1 %v4806_v13, %s4429_s25 }
 0xccf   :  { %4229 = vrot.lane.b32.xlu1 %v4596_v10, %s4431_s27 }
 0xcd3   :  { %4234 = vrot.lane.b32.xlu1 %v4606_v32, %s4431_s27 }
 0xcd4   :  { %4224 = vrot.lane.b32.xlu0 %v4806_v13, %s4430_s26 }
 0xd42   :  { %v1444_v63 = vpop.xlane.xlu0 %1443 }
 0xd43   :  { %v1441_v11 = vpop.xlane.xlu1 %1440 }
 0xd44   :  { %4346 = vrcp.f32 %v1441_v11 }
 0xd45   :  { %4348 = vrcp.f32 %v1444_v63 }
 0xd47   :  { %v1447_v12 = vpop.xlane.xlu1 %1446 }
 0xd48   :  { %4350 = vrcp.f32 %v1447_v12 }
 0xd4b   :  { %v4220_v15 = vpop.permute.xlu1 %4219  ;;  %v1450_v16 = vpop.xlane.xlu0 %1449 }
 0xd4c   :  { %v4222_v0 = vunpack.i.h.bf16 %v4220_v15  ;;  %v4221_v1 = vunpack.i.l.bf16 %v4220_v15  ;;  %4352 = vrcp.f32 %v1450_v16 }
 0xd4e   :  { %v4347_v22 = vpop.eup %4346  ;;  %v4021_v27 = vpack.c.bf16 %v4222_v0, %v4221_v1 }
 0xd4f   :  { %v4349_v10 = vpop.eup %4348  ;;  %v4225_v30 = vpop.permute.xlu0 %4224  ;;  %v1455_v33 = vmul.f32 %v4347_v22, %v4341_v56 }
 0xd50   :  { %v4227_v32 = vunpack.i.h.bf16 %v4225_v30  ;;  %v4226_v34 = vunpack.i.l.bf16 %v4225_v30  ;;  %4022 = vmatprep.subr.bf16.mxu1 %v4021_v27  ;;  %v1456_v35 = vmul.f32 %v4349_v10, %v4339_v40  ;;  %v4230_v42 = vpop.permute.xlu1 %4229 }
 0xd51   :  { %4024 = vmatpush3.bf16.msra.mxu1 %v4021_v27  ;;  %3754 = vmatprep.mubr.msk.f32.mxu1 %vm129_vm1, %v1455_v33  ;;  %v4232_v26 = vunpack.i.h.bf16 %v4230_v42  ;;  %v4231_v45 = vunpack.i.l.bf16 %v4230_v42 }
 0xd52   :  { %v4351_v13 = vpop.eup %4350  ;;  %v4025_v3 = vpack.c.bf16 %v4227_v32, %v4226_v34 }
 0xd53   :  { %v1457_v38 = vmul.f32 %v4351_v13, %v4343_v59  ;;  %v4029_v29 = vpack.c.bf16 %v4232_v26, %v4231_v45 }
 0xd54   :  { %3755 = vmatmul.mubr.msk.f32.vlgmr.msra.gmra.mrb[14].mxu1 %vm129_vm1, %v1456_v35  ;;  %4026 = vmatprep.subr.bf16.mxu1 %v4025_v3  ;;  %v4235_v2 = vpop.permute.xlu1 %4234 }
 0xd55   :  { %4028 = vmatpush3.bf16.msra.mxu1 %v4025_v3  ;;  %3761 = vmatprep.mubr.msk.f32.mxu1 %vm129_vm1, %v1457_v38  ;;  %v4237_v46 = vunpack.i.h.bf16 %v4235_v2  ;;  %v4236_v48 = vunpack.i.l.bf16 %v4235_v2 }
 0xd56   :  { %v4353_v6 = vpop.eup %4352  ;;  %4038 = vmatprep.subr.bf16.mxu1 %v4644_v19  ;;  %4030 = vmatprep.subr.bf16.mxu0 %v4029_v29 }
 0xd57   :  { %v1458_v41 = vmul.f32 %v4353_v6, %v4345_v61  ;;  %4032 = vmatpush3.bf16.msra.mxu0 %v4029_v29  ;;  %v4033_v49 = vpack.c.bf16 %v4237_v46, %v4236_v48 }
 0xd59   :  { %3762 = vmatmul.mubr.msk.f32.vlgmr.msra.gmra.mrb[16].mxu1 %vm129_vm1, %v1458_v41  ;;  %4034 = vmatprep.subr.bf16.mxu0 %v4033_v49 }
 0xd5a   :  { %4040 = vmatpush3.bf16.msra.mxu1 %v4644_v19 }
 0xd5b   :  { %4042 = vmatprep.subr.bf16.mxu1 %v4660_v21  ;;  %4036 = vmatpush3.bf16.msra.mxu0 %v4033_v49 }
 0xd5c   :  { %4046 = vmatprep.subr.bf16.mxu0 %v4689_v43 }
 0xd5e   :  { %4044 = vmatpush3.bf16.msra.mxu1 %v4660_v21 }
 0xd5f   :  { %4061 = vmatprep.subr.bf16.mxu1 %v4433_v54 }
 0xe27   :  { %v3756_v19 = vpop.f32.mrb[14].mxu1 }
 0xe28   :  { %v1537_v39 = vpop.f32.mrb[15].mxu1 }
 0xe2c   :  { %v3763_v36 = vpop.f32.mrb[16].mxu1 }
 0xe2d   :  { %1638 = vrot.lane.b32.xlu1 %v3763_v36, %s4432_s28  ;;  %v1624_v21 = vpop.f32.mrb[17].mxu1 }
 0xe2e   :  { %1636 = vrot.lane.b32.xlu0 %v1624_v21, %s4432_s28 }
 0xe9f   :  { %v1639_v8 = vpop.permute.xlu1 %1638 }
 0xea0   :  { %v1643_v55 = vsel %vm129_vm1, %v3756_v19, %v1639_v8  ;;  %v1637_v40 = vpop.permute.xlu0 %1636 }
 0xea1   :  { %v1642_v56 = vsel %vm129_vm1, %v1537_v39, %v1637_v40  ;;  %v1649_v58 = vmul.f32 %v3408_v17, %v1643_v55 }
 0xea2   :  { %v1648_v57 = vmul.f32 %v3408_v17, %v1642_v56 }
 0xea4   :  { %3772 = vmatprep.mubr.msk.f32.mxu0 %vm41_vm0, %v1648_v57 }
 0xea5   :  { %3773 = vmatmul.mubr.msk.f32.vlgmr.msra.gmra.mrb[12].mxu0 %vm41_vm0, %v1649_v58 }
 0xea6   :  { %4048 = vmatpush3.bf16.msra.mxu0 %v4689_v43 }
 0xea7   :  { %4050 = vmatprep.subr.bf16.mxu0 %v4701_v4 }
 0xeaa   :  { %4052 = vmatpush3.bf16.msra.mxu0 %v4701_v4 }
 0xeab   :  { %4054 = vmatprep.subr.bf16.mxu0 %v4708_v47 }
 0xeae   :  { %4056 = vmatpush3.bf16.msra.mxu0 %v4708_v47 }
 0xeaf   :  { %4058 = vmatprep.subr.bf16.mxu0 %v4718_v50 }
 0xeb2   :  { %4060 = vmatpush3.bf16.msra.mxu0 %v4718_v50 }
 0xf78   :  { %v3774_v59 = vpop.f32.mrb[12].mxu0 }
 0xf79   :  { %v1753_v60 = vadd.f32 %v3774_v59, %v4622_v52  ;;  %v1747_v61 = vpop.f32.mrb[13].mxu0 }
 0xf7a   :  { %v1748_v62 = vadd.f32 %v4622_v52, %v1747_v61 }
 0xf7b   :  { %v1757_v43 = vadd.f32 %v1753_v60, %v4782_v23 }
 0xf7c   :  { %v1756_v63 = vadd.f32 %v1748_v62, %v4785_v25 }
 0xf7d   :  { %v1763_v4 = vsel %vm41_vm0, %v1757_v43, 0.0 }
 0xf7e   :  { %1764 = vadd.xlane.f32.xlu1 %v1763_v4  ;;  %v1760_v11 = vsel %vm41_vm0, %v1756_v63, 0.0 }
 0xf7f   :  { %1761 = vadd.xlane.f32.xlu0 %v1760_v11 }
0x100b   :  { %v1765_v47 = vpop.xlane.xlu1 %1764 }
0x100c   :  { %v1767_v12 = vmul.f32 0.03125, %v1765_v47  ;;  %v1762_v15 = vpop.xlane.xlu0 %1761 }
0x100d   :  { %v1766_v50 = vmul.f32 0.03125, %v1762_v15 }
0x100e   :  { %v1769_v16 = vsub.f32 %v1757_v43, %v1767_v12 }
0x100f   :  { %v1768_v0 = vsub.f32 %v1756_v63, %v1766_v50 }
0x1010   :  { %v1771_v52 = vmul.f32 %v1769_v16, %v1769_v16 }
0x1011   :  { %v1770_v1 = vmul.f32 %v1768_v0, %v1768_v0 }
0x1012   :  { %v1775_v23 = vsel %vm41_vm0, %v1771_v52, 0.0 }
0x1013   :  { %v1772_v22 = vsel %vm41_vm0, %v1770_v1, 0.0 }
0x1014   :  { %1773 = vadd.xlane.f32.xlu0 %v1772_v22 }
0x1018   :  { %1776 = vadd.xlane.f32.xlu0 %v1775_v23 }
0x10a1   :  { %v1774_v25 = vpop.xlane.xlu0 %1773 }
0x10a2   :  { %v1778_v27 = vmul.f32 0.03125, %v1774_v25  ;;  %v4915_v25 = vld [vmem:[%s5180_s3] sm:$0xff] }
0x10a4   :  { %v1780_v10 = vadd.f32 1e-12, %v1778_v27  ;;  %v4920_v27 = vld [vmem:[%s5180_s3 + $0x10] sm:$0xff] }
0x10a5   :  { %v1777_v30 = vpop.xlane.xlu0 %1776 }
0x10a6   :  { %4354 = vrsqrt.f32 %v1780_v10  ;;  %v1779_v33 = vmul.f32 0.03125, %v1777_v30  ;;  %v4073_v10 = vpack.c.bf16 %v4920_v27, %v4915_v25 }
0x10a8   :  { %v1781_v32 = vadd.f32 1e-12, %v1779_v33  ;;  %4074 = vmatprep.subr.bf16.mxu0 %v4073_v10 }
0x10aa   :  { %4356 = vrsqrt.f32 %v1781_v32 }
0x10b0   :  { %v4355_v34 = vpop.eup %4354 }
0x10b1   :  { %v1784_v13 = vmul.f32 %v4355_v34, %v1768_v0 }
0x10b3   :  { %v1790_v35 = vmul.f32 %v4667_v28, %v1784_v13 }
0x10b4   :  { %v4357_v3 = vpop.eup %4356 }
0x10b5   :  { %v1785_v38 = vmul.f32 %v4357_v3, %v1769_v16  ;;  %v1796_v6 = vadd.f32 %v4672_v31, %v1790_v35 }
0x10b7   :  { %v1791_v41 = vmul.f32 %v4667_v28, %v1785_v38  ;;  %3783 = vmatprep.mubr.msk.f32.mxu1 %vm41_vm0, %v1796_v6 }
0x10b9   :  { %v1797_v42 = vadd.f32 %v4672_v31, %v1791_v41 }
0x10bb   :  { %3784 = vmatmul.mubr.msk.f32.vlgmr.msra.gmra.mrb[18].mxu1 %vm41_vm0, %v1797_v42 }
0x10bc   :  { %3813 = vmatprep.mubr.msk.f32.mxu1 %vm4434_vm4, %v4435_v5 }
0x118e   :  { %v3785_v26 = vpop.f32.mrb[18].mxu1 }
0x118f   :  { %v1885_v45 = vadd.f32 %v3785_v26, %v4727_v51  ;;  %v1879_v29 = vpop.f32.mrb[19].mxu1 }
0x1190   :  { %v1880_v2 = vadd.f32 %v4727_v51, %v1879_v29 }
0x1191   :  { %v1891_v46 = vmul.f32 0.044715, %v1885_v45  ;;  %v1889_v58 = vmul.f32 0.5, %v1885_v45 }
0x1192   :  { %v1890_v48 = vmul.f32 0.044715, %v1880_v2  ;;  %v1888_v56 = vmul.f32 0.5, %v1880_v2 }
0x1193   :  { %v1893_v49 = vmul.f32 %v1891_v46, %v1885_v45 }
0x1194   :  { %v1892_v19 = vmul.f32 %v1890_v48, %v1880_v2 }
0x1195   :  { %v1895_v28 = vmul.f32 %v1893_v49, %v1885_v45 }
0x1196   :  { %v1894_v39 = vmul.f32 %v1892_v19, %v1880_v2 }
0x1197   :  { %v1897_v36 = vadd.f32 %v1895_v28, %v1885_v45 }
0x1198   :  { %v1896_v21 = vadd.f32 %v1894_v39, %v1880_v2 }
0x1199   :  { %v1899_v31 = vmul.f32 0.7978846, %v1897_v36 }
0x119a   :  { %v1898_v17 = vmul.f32 0.7978846, %v1896_v21 }
0x119b   :  { %4358 = vtanh.f32 %v1899_v31 }
0x119c   :  { %4360 = vtanh.f32 %v1898_v17 }
0x11a5   :  { %v4359_v8 = vpop.eup %4358 }
0x11a6   :  { %v4361_v55 = vpop.eup %4360  ;;  %v1903_v40 = vadd.f32 1.0, %v4359_v8 }
0x11a7   :  { %v1902_v57 = vadd.f32 1.0, %v4361_v55 }
0x11a8   :  { %v1905_v51 = vmul.f32 %v1903_v40, %v1889_v58 }
0x11a9   :  { %v1904_v59 = vmul.f32 %v1902_v57, %v1888_v56 }
0x11ab   :  { %3802 = vmatprep.mubr.msk.f32.mxu0 %vm817_vm3, %v1904_v59  ;;  %v3427_v59 = vld [vmem:[%s5182_s5] ss:$0 sm:$0xff] }
0x11ac   :  { %3803 = vmatmul.mubr.msk.f32.vlgmr.msra.gmra.mrb[14].mxu0 %vm817_vm3, %v1905_v51 }
0x11ad   :  { %4076 = vmatpush3.bf16.msra.mxu0 %v4073_v10 }
0x127f   :  { %v3804_v60 = vpop.f32.mrb[14].mxu0 }
0x1280   :  { %v1997_v61 = vadd.f32 %v3804_v60, %v4739_v24  ;;  %v1991_v62 = vpop.f32.mrb[15].mxu0 }
0x1281   :  { %v1992_v43 = vadd.f32 %v4739_v24, %v1991_v62 }
0x1282   :  { %v2001_v63 = vadd.f32 %v1997_v61, %v1797_v42 }
0x1283   :  { %v2000_v4 = vadd.f32 %v1992_v43, %v1796_v6 }
0x1284   :  { %v2007_v11 = vsel %vm41_vm0, %v2001_v63, 0.0 }
0x1285   :  { %2008 = vadd.xlane.f32.xlu0 %v2007_v11  ;;  %v2004_v47 = vsel %vm41_vm0, %v2000_v4, 0.0 }
0x1286   :  { %2005 = vadd.xlane.f32.xlu1 %v2004_v47 }
0x1312   :  { %v2009_v12 = vpop.xlane.xlu0 %2008 }
0x1313   :  { %v2011_v15 = vmul.f32 0.03125, %v2009_v12  ;;  %v2006_v50 = vpop.xlane.xlu1 %2005 }
0x1314   :  { %v2010_v16 = vmul.f32 0.03125, %v2006_v50 }
0x1315   :  { %v2013_v0 = vsub.f32 %v2001_v63, %v2011_v15 }
0x1316   :  { %v2012_v1 = vsub.f32 %v2000_v4, %v2010_v16 }
0x1317   :  { %v2015_v22 = vmul.f32 %v2013_v0, %v2013_v0 }
0x1318   :  { %v2014_v52 = vmul.f32 %v2012_v1, %v2012_v1 }
0x1319   :  { %v2019_v23 = vsel %vm41_vm0, %v2015_v22, 0.0 }
0x131a   :  { %2020 = vadd.xlane.f32.xlu0 %v2019_v23  ;;  %v2016_v24 = vsel %vm41_vm0, %v2014_v52, 0.0 }
0x131b   :  { %2017 = vadd.xlane.f32.xlu1 %v2016_v24 }
0x132c   :  { %4239 = vrot.lane.b32.xlu1 %v4750_v37, %s4429_s25 }
0x1330   :  { %4244 = vrot.lane.b32.xlu0 %v4756_v53, %s4429_s25  ;;  %4249 = vrot.lane.b32.xlu1 %v4750_v37, %s4431_s27  ;;  %v4927_v37 = vld [vmem:[%s5180_s3 + $0x20] sm:$0xff] }
0x1334   :  { %4254 = vrot.lane.b32.xlu1 %v4756_v53, %s4431_s27  ;;  %v4932_v53 = vld [vmem:[%s5180_s3 + $0x30] sm:$0xff] }
0x1335   :  { %v4077_v30 = vpack.c.bf16 %v4932_v53, %v4927_v37 }
0x1337   :  { %4078 = vmatprep.subr.bf16.mxu0 %v4077_v30 }
0x1338   :  { %4080 = vmatpush3.bf16.msra.mxu0 %v4077_v30 }
0x13a7   :  { %v2021_v33 = vpop.xlane.xlu0 %2020 }
0x13a8   :  { %v2023_v32 = vmul.f32 0.03125, %v2021_v33  ;;  %v2018_v34 = vpop.xlane.xlu1 %2017 }
0x13a9   :  { %v2022_v13 = vmul.f32 0.03125, %v2018_v34 }
0x13aa   :  { %v2025_v35 = vadd.f32 1e-12, %v2023_v32 }
0x13ab   :  { %v2024_v3 = vadd.f32 1e-12, %v2022_v13  ;;  %v4245_v38 = vpop.permute.xlu0 %4244 }
0x13ac   :  { %4362 = vrsqrt.f32 %v2025_v35  ;;  %v4240_v6 = vpop.permute.xlu1 %4239  ;;  %v4247_v41 = vunpack.i.h.bf16 %v4245_v38  ;;  %v4246_v45 = vunpack.i.l.bf16 %v4245_v38 }
0x13ad   :  { %4364 = vrsqrt.f32 %v2024_v3  ;;  %v4242_v42 = vunpack.i.h.bf16 %v4240_v6  ;;  %v4241_v26 = vunpack.i.l.bf16 %v4240_v6  ;;  %v4399_v6 = vld [vmem:[%s5178_s1] sm:$0xff] }
0x13ae   :  { %v4065_v2 = vpack.c.bf16 %v4247_v41, %v4246_v45 }
0x13af   :  { %v4062_v29 = vpack.c.bf16 %v4242_v42, %v4241_v26 }
0x13b1   :  { %4063 = vmatpush3.bf16.msra.mxu1 %v4062_v29  ;;  %v4400_v29 = vld [vmem:[%s5178_s1 + $0x10] sm:$0xff] }
0x13b2   :  { %4064 = vmatprep.subr.bf16.mxu1 %v4433_v54 }
0x13b5   :  { %4066 = vmatpush3.bf16.msra.mxu1 %v4065_v2 }
0x13b6   :  { %v4363_v46 = vpop.eup %4362  ;;  %4067 = vmatprep.subr.bf16.mxu1 %v4433_v54 }
0x13b7   :  { %v4365_v48 = vpop.eup %4364  ;;  %v2029_v49 = vmul.f32 %v4363_v46, %v2013_v0 }
0x13b8   :  { %v2028_v19 = vmul.f32 %v4365_v48, %v2012_v1  ;;  %v4401_v48 = vld [vmem:[%s5178_s1 + $0x18] sm:$0xff] }
0x13b9   :  { %v2035_v28 = vmul.f32 %v4771_v14, %v2029_v49 }
0x13ba   :  { %v2034_v39 = vmul.f32 %v4771_v14, %v2028_v19  ;;  %v4250_v14 = vpop.permute.xlu1 %4249 }
0x13bb   :  { %v4941_v36 = vadd.f32 %v4777_v7, %v2035_v28  ;;  %v4252_v8 = vunpack.i.h.bf16 %v4250_v14 }
0x13bc   :  { %v4944_v21 = vadd.f32 %v4777_v7, %v2034_v39  ;;  %v4251_v7 = vunpack.i.l.bf16 %v4250_v14 }
0x13bd   :  { %v2043_v31 = vrot.slane %v4941_v36, 7 }
0x13be   :  { %3835 = vmatprep.mubr.msk.f32.mxu0 %vm41_vm0, %v4944_v21  ;;  %v4068_v55 = vpack.c.bf16 %v4252_v8, %v4251_v7  ;;  %v4255_v40 = vpop.permute.xlu1 %4254 }
0x13bf   :  { %3836 = vmatmul.mubr.msk.f32.vlgmr.msra.gmra.mrb[16].mxu0 %vm41_vm0, %v4941_v36  ;;  %v2045_v17 = vsel %vm944_vm5, %v4944_v21, %v2043_v31  ;;  %v4257_v56 = vunpack.i.h.bf16 %v4255_v40  ;;  %v4256_v57 = vunpack.i.l.bf16 %v4255_v40 }
0x13c0   :  { %3814 = vmatmul.mubr.msk.f32.vlgmr.msra.gmra.mrb[20].mxu1 %vm41_vm0, %v2045_v17 }
0x13c1   :  { %3824 = vmatprep.mubr.msk.f32.mxu1 %vm4434_vm4, %v4435_v5  ;;  %4069 = vmatpush3.bf16.msra.mxu1 %v4068_v55  ;;  %v4071_v58 = vpack.c.bf16 %v4257_v56, %v4256_v57 }
0x13c2   :  { %4070 = vmatprep.subr.bf16.mxu1 %v4433_v54 }
0x13c5   :  { %4072 = vmatpush3.bf16.msra.mxu1 %v4071_v58 }
0x1492   :  { %v3837_v51 = vpop.f32.mrb[16].mxu0 }
0x1493   :  { %v2324_v60 = vadd.f32 %v3837_v51, %v3427_v59  ;;  %v2136_v61 = vpop.f32.mrb[20].mxu1  ;;  %v2318_v62 = vpop.f32.mrb[17].mxu0 }
0x1494   :  { %v2137_v43 = vadd.f32 %v4801_v44, %v2136_v61  ;;  %v2319_v63 = vadd.f32 %v3427_v59, %v2318_v62  ;;  %v3815_v4 = vpop.f32.mrb[21].mxu1 }
0x1496   :  { %4366 = vtanh.f32 %v2137_v43  ;;  %v4961_v11 = vpack.i.bf16 %v2324_v60, %v2319_v63 }
0x1498   :  { %4264 = vrot.lane.b32.xlu1 %v4961_v11, %s4428_s16  ;;  %4259 = vrot.lane.b32.xlu0 %v4961_v11, %s4427_s0 }
0x149c   :  { %2418 = vrot.lane.b32.xlu1 %v2324_v60, %s4426_s15  ;;  %2416 = vrot.lane.b32.xlu0 %v2319_v63, %s4426_s15 }
0x14a0   :  { %v4969_v47 = vpop.eup %4366 }
0x14a1   :  { %3825 = vmatmul.mubr.msk.f32.vlgmr.msra.gmra.mrb[22].mxu1 %vm41_vm0, %v4969_v47 }
0x14a2   :  { %3842 = vmatprep.mubr.msk.f32.mxu1 %vm129_vm1, %v2319_v63 }
0x150a   :  { %v4260_v44 = vpop.permute.xlu0 %4259  ;;  %v4265_v12 = vpop.permute.xlu1 %4264 }
0x150b   :  { %v4262_v15 = vunpack.i.h.bf16 %v4260_v44  ;;  %v4261_v50 = vunpack.i.l.bf16 %v4260_v44  ;;  %v4267_v16 = vunpack.i.h.bf16 %v4265_v12  ;;  %v4266_v0 = vunpack.i.l.bf16 %v4265_v12 }
0x150c   :  { %v4278_v44 = vpack.i.bf16 %v4920_v27, %v4915_v25 }
0x150d   :  { %v4081_v1 = vpack.c.bf16 %v4262_v15, %v4261_v50  ;;  %v4087_v22 = vpack.c.bf16 %v4267_v16, %v4266_v0 }
0x150e   :  { %v2417_v52 = vpop.permute.xlu0 %2416  ;;  %v2419_v23 = vpop.permute.xlu1 %2418 }
0x150f   :  { %4083 = vmatprep.subr.msk.bf16.mxu1 %vm4544_vm2, %v4081_v1  ;;  %4089 = vmatprep.subr.msk.bf16.mxu0 %vm4544_vm2, %v4087_v22 }
0x1510   :  { %3849 = vmatprep.mubr.msk.f32.mxu0 %vm129_vm1, %v2417_v52  ;;  %4086 = vmatpush3.bf16.xpose.msk.msra.mxu1 %vm4544_vm2, %v4081_v1 }
0x1511   :  { %4092 = vmatpush3.bf16.xpose.msk.msra.mxu0 %vm4544_vm2, %v4087_v22 }
0x1517   :  { %3843 = vmatmul.mubr.msk.f32.vlgmr.msra.gmra.mrb[24].mxu1 %vm129_vm1, %v2324_v60 }
0x1518   :  { %3850 = vmatmul.mubr.msk.f32.vlgmr.msra.gmra.mrb[18].mxu0 %vm129_vm1, %v2419_v23 }
0x1574   :  { %v4985_v24 = vpop.f32.mrb[22].mxu1 }
0x1575   :  { %v3826_v10 = vpop.f32.mrb[23].mxu1 }
0x15ea   :  { %v3844_v30 = vpop.f32.mrb[24].mxu1 }
0x15eb   :  { %v2508_v33 = vmul.f32 0.25, %v3844_v30  ;;  %v3851_v32 = vpop.f32.mrb[18].mxu0  ;;  %v2407_v34 = vpop.f32.mrb[25].mxu1 }
0x15ec   :  { %v2507_v13 = vmul.f32 0.25, %v2407_v34  ;;  %v2498_v35 = vpop.f32.mrb[19].mxu0  ;;  %v2510_v26 = vmul.f32 0.25, %v3851_v32 }
0x15ed   :  { %v2509_v3 = vmul.f32 0.25, %v2498_v35  ;;  %v2512_v38 = vadd.f32 %v4398_v18, %v2508_v33  ;;  %v4283_v18 = vpack.i.bf16 %v4932_v53, %v4927_v37  ;;  %v3442_v53 = vld [vmem:[%s5179_s2 + $0x2] ss:$0 sm:$0xff] }
0x15ee   :  { %v2511_v41 = vadd.f32 %v4399_v6, %v2507_v13  ;;  %v2514_v49 = vadd.f32 %v4401_v48, %v2510_v26 }
0x15ef   :  { %v2518_v42 = vsel %vm129_vm1, %v2512_v38, -inf  ;;  %v2513_v2 = vadd.f32 %v4400_v29, %v2509_v3 }
0x15f0   :  { %2519 = vmax.xlane.f32.xlu1 %v2518_v42  ;;  %v2515_v45 = vsel %vm129_vm1, %v2511_v41, -inf  ;;  %v2524_v19 = vsel %vm129_vm1, %v2514_v49, -inf }
0x15f1   :  { %2516 = vmax.xlane.f32.xlu0 %v2515_v45  ;;  %v2521_v46 = vsel %vm129_vm1, %v2513_v2, -inf }
0x15f5   :  { %2522 = vmax.xlane.f32.xlu0 %v2521_v46 }
0x15f9   :  { %2525 = vmax.xlane.f32.xlu0 %v2524_v19 }
0x167d   :  { %v2520_v28 = vpop.xlane.xlu1 %2519 }
0x167e   :  { %v2528_v39 = vsub.f32 %v2512_v38, %v2520_v28  ;;  %v2517_v31 = vpop.xlane.xlu0 %2516 }
0x167f   :  { %v2527_v17 = vsub.f32 %v2511_v41, %v2517_v31 }
0x1680   :  { %v2533_v14 = vmul.f32 1.442695, %v2528_v39 }
0x1681   :  { %v2531_v8 = vmul.f32 1.442695, %v2527_v17 }
0x1682   :  { %4368 = vpow2.f32 %v2533_v14  ;;  %v2523_v7 = vpop.xlane.xlu0 %2522 }
0x1683   :  { %4370 = vpow2.f32 %v2531_v8  ;;  %v2529_v55 = vsub.f32 %v2513_v2, %v2523_v7  ;;  %v3443_v8 = vld [vmem:[%s5182_s5 + $0x1] ss:$0 sm:$0xff] }
0x1685   :  { %v2535_v40 = vmul.f32 1.442695, %v2529_v55 }
0x1686   :  { %v2526_v56 = vpop.xlane.xlu0 %2525 }
0x1687   :  { %4372 = vpow2.f32 %v2535_v40  ;;  %v2530_v57 = vsub.f32 %v2514_v49, %v2526_v56 }
0x1689   :  { %v2537_v58 = vmul.f32 1.442695, %v2530_v57 }
0x168b   :  { %4374 = vpow2.f32 %v2537_v58 }
0x168c   :  { %v4369_v59 = vpop.eup %4368 }
0x168d   :  { %v4371_v51 = vpop.eup %4370  ;;  %v2542_v60 = vsel %vm129_vm1, %v4369_v59, 0.0 }
0x168e   :  { %2543 = vadd.xlane.f32.xlu0 %v2542_v60  ;;  %v2539_v61 = vsel %vm129_vm1, %v4371_v51, 0.0 }
0x168f   :  { %2540 = vadd.xlane.f32.xlu1 %v2539_v61 }
0x1691   :  { %v4373_v62 = vpop.eup %4372 }
0x1692   :  { %v2545_v43 = vsel %vm129_vm1, %v4373_v62, 0.0 }
0x1693   :  { %2546 = vadd.xlane.f32.xlu1 %v2545_v43 }
0x1695   :  { %v4375_v63 = vpop.eup %4374 }
0x1696   :  { %v2548_v4 = vsel %vm129_vm1, %v4375_v63, 0.0 }
0x1697   :  { %2549 = vadd.xlane.f32.xlu0 %v2548_v4 }
0x16a4   :  { %4269 = vrot.lane.b32.xlu1 %v4961_v11, %s4429_s25 }
0x16a8   :  { %4279 = vrot.lane.b32.xlu1 %v4278_v44, %s4431_s27 }
0x16ac   :  { %4284 = vrot.lane.b32.xlu1 %v4283_v18, %s4431_s27 }
0x16ad   :  { %4274 = vrot.lane.b32.xlu0 %v4961_v11, %s4430_s26 }
0x171b   :  { %v2544_v12 = vpop.xlane.xlu0 %2543 }
0x171c   :  { %v2541_v15 = vpop.xlane.xlu1 %2540 }
0x171d   :  { %4376 = vrcp.f32 %v2541_v15 }
0x171e   :  { %4378 = vrcp.f32 %v2544_v12 }
0x1720   :  { %v2547_v50 = vpop.xlane.xlu1 %2546 }
0x1721   :  { %4380 = vrcp.f32 %v2547_v50  ;;  %v5047_v50 = vld [vmem:[%s5180_s3 + $0x18] sm:$0xff] }
0x1724   :  { %v4270_v16 = vpop.permute.xlu1 %4269  ;;  %v2550_v0 = vpop.xlane.xlu0 %2549 }
0x1725   :  { %v4272_v1 = vunpack.i.h.bf16 %v4270_v16  ;;  %v4271_v22 = vunpack.i.l.bf16 %v4270_v16  ;;  %4382 = vrcp.f32 %v2550_v0  ;;  %v5054_v0 = vld [vmem:[%s5180_s3 + $0x28] sm:$0xff] }
0x1727   :  { %v4377_v52 = vpop.eup %4376  ;;  %v4093_v23 = vpack.c.bf16 %v4272_v1, %v4271_v22  ;;  %v5059_v1 = vld [vmem:[%s5180_s3 + $0x38] sm:$0xff] }
0x1728   :  { %v4379_v10 = vpop.eup %4378  ;;  %v4275_v11 = vpop.permute.xlu0 %4274  ;;  %v2555_v30 = vmul.f32 %v4377_v52, %v4371_v51  ;;  %v4113_v22 = vpack.c.bf16 %v5059_v1, %v5054_v0 }
0x1729   :  { %v4277_v33 = vunpack.i.h.bf16 %v4275_v11  ;;  %v4276_v25 = vunpack.i.l.bf16 %v4275_v11  ;;  %4094 = vmatprep.subr.bf16.mxu1 %v4093_v23  ;;  %v2556_v32 = vmul.f32 %v4379_v10, %v4369_v59  ;;  %v4280_v38 = vpop.permute.xlu1 %4279 }
0x172a   :  { %4096 = vmatpush3.bf16.msra.mxu1 %v4093_v23  ;;  %3856 = vmatprep.mubr.msk.f32.mxu1 %vm129_vm1, %v2555_v30  ;;  %v4282_v6 = vunpack.i.h.bf16 %v4280_v38  ;;  %v4281_v41 = vunpack.i.l.bf16 %v4280_v38 }
0x172b   :  { %v4381_v27 = vpop.eup %4380  ;;  %v4097_v34 = vpack.c.bf16 %v4277_v33, %v4276_v25 }
0x172c   :  { %v2557_v13 = vmul.f32 %v4381_v27, %v4373_v62  ;;  %v4101_v42 = vpack.c.bf16 %v4282_v6, %v4281_v41  ;;  %v3446_v27 = vld [vmem:[%s5182_s5 + $0x2] ss:$0 sm:$0xff] }
0x172d   :  { %3857 = vmatmul.mubr.msk.f32.vlgmr.msra.gmra.mrb[26].mxu1 %vm129_vm1, %v2556_v32  ;;  %4098 = vmatprep.subr.bf16.mxu1 %v4097_v34  ;;  %v4285_v26 = vpop.permute.xlu1 %4284  ;;  %v3006_v41 = vld [vmem:[%s5181_s4] sm:$0xff] }
0x172e   :  { %4100 = vmatpush3.bf16.msra.mxu1 %v4097_v34  ;;  %3863 = vmatprep.mubr.msk.f32.mxu1 %vm129_vm1, %v2557_v13  ;;  %v4287_v45 = vunpack.i.h.bf16 %v4285_v26  ;;  %v4286_v29 = vunpack.i.l.bf16 %v4285_v26  ;;  %v3447_v34 = vld [vmem:[%s5182_s5 + $0x3] ss:$0 sm:$0xff] }
0x172f   :  { %v4383_v35 = vpop.eup %4382  ;;  %4102 = vmatprep.subr.bf16.mxu0 %v4101_v42 }
0x1730   :  { %v2558_v3 = vmul.f32 %v4383_v35, %v4375_v63  ;;  %4104 = vmatpush3.bf16.msra.mxu0 %v4101_v42  ;;  %v4105_v2 = vpack.c.bf16 %v4287_v45, %v4286_v29  ;;  %v3007_v42 = vld [vmem:[%s5181_s4 + $0x8] sm:$0xff]  ;;  %v3008_v45 = vld [vmem:[%s5181_s4 + $0x10] sm:$0xff]  ;;  %v3009_v29 = vld [vmem:[%s5181_s4 + $0x18] sm:$0xff] }
0x1731   :  { %v4117_v26 = vpack.c.bf16 %v3007_v42, %v3006_v41  ;;  %v4293_v42 = vpack.i.bf16 %v5059_v1, %v5054_v0 }
0x1732   :  { %3864 = vmatmul.mubr.msk.f32.vlgmr.msra.gmra.mrb[28].mxu1 %vm129_vm1, %v2558_v3  ;;  %4106 = vmatprep.subr.bf16.mxu0 %v4105_v2 }
0x1734   :  { %4108 = vmatpush3.bf16.msra.mxu0 %v4105_v2  ;;  %v4121_v2 = vpack.c.bf16 %v3009_v29, %v3008_v45 }
0x1735   :  { %4118 = vmatprep.subr.bf16.mxu0 %v4117_v26 }
0x1800   :  { %v3858_v46 = vpop.f32.mrb[26].mxu1 }
0x1801   :  { %v2637_v48 = vpop.f32.mrb[27].mxu1 }
0x1805   :  { %v3865_v49 = vpop.f32.mrb[28].mxu1 }
0x1806   :  { %2738 = vrot.lane.b32.xlu1 %v3865_v49, %s4432_s28  ;;  %v2724_v37 = vpop.f32.mrb[29].mxu1 }
0x1807   :  { %2736 = vrot.lane.b32.xlu0 %v2724_v37, %s4432_s28  ;;  %v3012_v37 = vld [vmem:[%s5181_s4 + $0x30] sm:$0xff] }
0x1878   :  { %v2739_v19 = vpop.permute.xlu1 %2738 }
0x1879   :  { %v2743_v28 = vsel %vm129_vm1, %v3858_v46, %v2739_v19  ;;  %v2737_v39 = vpop.permute.xlu0 %2736  ;;  %v3010_v46 = vld [vmem:[%s5181_s4 + $0x20] sm:$0xff] }
0x187a   :  { %v2742_v31 = vsel %vm129_vm1, %v2637_v48, %v2737_v39  ;;  %v2749_v14 = vmul.f32 %v3442_v53, %v2743_v28  ;;  %v3011_v48 = vld [vmem:[%s5181_s4 + $0x28] sm:$0xff]  ;;  %v3448_v28 = vld [vmem:[%s5182_s5 + $0x4] ss:$0 sm:$0xff] }
0x187b   :  { %v2748_v17 = vmul.f32 %v3442_v53, %v2742_v31  ;;  %v4125_v49 = vpack.c.bf16 %v3011_v48, %v3010_v46  ;;  %v3013_v53 = vld [vmem:[%s5181_s4 + $0x38] sm:$0xff] }
0x187c   :  { %v4129_v19 = vpack.c.bf16 %v3013_v53, %v3012_v37 }
0x187d   :  { %3874 = vmatprep.mubr.msk.f32.mxu0 %vm41_vm0, %v2748_v17 }
0x187e   :  { %3875 = vmatmul.mubr.msk.f32.vlgmr.msra.gmra.mrb[20].mxu0 %vm41_vm0, %v2749_v14 }
0x187f   :  { %4120 = vmatpush3.bf16.msra.mxu0 %v4117_v26  ;;  %v3391_v26 = vld [vmem:[%s5182_s5 + $0x9] ss:$0 sm:$0xff] }
0x1880   :  { %4122 = vmatprep.subr.bf16.mxu0 %v4121_v2  ;;  %v1128_v45 = vadd.f32 %v3391_v26, %v4830_v9  ;;  %v2228_v29 = vadd.f32 %v3391_v26, %v4985_v24 }
0x1883   :  { %4124 = vmatpush3.bf16.msra.mxu0 %v4121_v2 }
0x1884   :  { %4126 = vmatprep.subr.bf16.mxu0 %v4125_v49 }
0x1887   :  { %4128 = vmatpush3.bf16.msra.mxu0 %v4125_v49 }
0x1888   :  { %4130 = vmatprep.subr.bf16.mxu0 %v4129_v19 }
0x188b   :  { %4132 = vmatpush3.bf16.msra.mxu0 %v4129_v19 }
0x1951   :  { %v3876_v7 = vpop.f32.mrb[20].mxu0 }
0x1952   :  { %v2853_v55 = vadd.f32 %v3876_v7, %v3443_v8  ;;  %v2847_v40 = vpop.f32.mrb[21].mxu0 }
0x1953   :  { %v2848_v56 = vadd.f32 %v3443_v8, %v2847_v40 }
0x1954   :  { %v2857_v57 = vadd.f32 %v2853_v55, %v4941_v36 }
0x1955   :  { %v2856_v58 = vadd.f32 %v2848_v56, %v4944_v21  ;;  %v5042_v21 = vld [vmem:[%s5180_s3 + $0x8] sm:$0xff] }
0x1956   :  { %v2863_v59 = vsel %vm41_vm0, %v2857_v57, 0.0  ;;  %v4109_v16 = vpack.c.bf16 %v5047_v50, %v5042_v21 }
0x1957   :  { %2864 = vadd.xlane.f32.xlu1 %v2863_v59  ;;  %v2860_v51 = vsel %vm41_vm0, %v2856_v58, 0.0 }
0x1958   :  { %2861 = vadd.xlane.f32.xlu0 %v2860_v51  ;;  %4110 = vmatprep.subr.bf16.mxu1 %v4109_v16 }
0x1959   :  { %4112 = vmatpush3.bf16.msra.mxu1 %v4109_v16 }
0x195a   :  { %4114 = vmatprep.subr.bf16.mxu1 %v4113_v22 }
0x195d   :  { %4116 = vmatpush3.bf16.msra.mxu1 %v4113_v22 }
0x195e   :  { %4133 = vmatprep.subr.bf16.mxu1 %v4433_v54 }
0x19e4   :  { %v2865_v60 = vpop.xlane.xlu1 %2864 }
0x19e5   :  { %v2867_v61 = vmul.f32 0.03125, %v2865_v60  ;;  %v2862_v62 = vpop.xlane.xlu0 %2861 }
0x19e6   :  { %v2866_v43 = vmul.f32 0.03125, %v2862_v62 }
0x19e7   :  { %v2869_v63 = vsub.f32 %v2857_v57, %v2867_v61 }
0x19e8   :  { %v2868_v4 = vsub.f32 %v2856_v58, %v2866_v43 }
0x19e9   :  { %v2871_v15 = vmul.f32 %v2869_v63, %v2869_v63 }
0x19ea   :  { %v2870_v44 = vmul.f32 %v2868_v4, %v2868_v4 }
0x19eb   :  { %v2875_v36 = vsel %vm41_vm0, %v2871_v15, 0.0 }
0x19ec   :  { %v2872_v12 = vsel %vm41_vm0, %v2870_v44, 0.0 }
0x19ed   :  { %2873 = vadd.xlane.f32.xlu0 %v2872_v12 }
0x19f1   :  { %2876 = vadd.xlane.f32.xlu0 %v2875_v36  ;;  %v3451_v36 = vld [vmem:[%s5182_s5 + $0x5] ss:$0 sm:$0xff] }
0x1a7a   :  { %v2874_v52 = vpop.xlane.xlu0 %2873 }
0x1a7b   :  { %v2878_v23 = vmul.f32 0.03125, %v2874_v52 }
0x1a7d   :  { %v2880_v10 = vadd.f32 1e-12, %v2878_v23 }
0x1a7e   :  { %v2877_v11 = vpop.xlane.xlu0 %2876 }
0x1a7f   :  { %4384 = vrsqrt.f32 %v2880_v10  ;;  %v2879_v30 = vmul.f32 0.03125, %v2877_v11 }
0x1a81   :  { %v2881_v33 = vadd.f32 1e-12, %v2879_v30 }
0x1a83   :  { %4386 = vrsqrt.f32 %v2881_v33 }
0x1a89   :  { %v4385_v25 = vpop.eup %4384 }
0x1a8a   :  { %v2884_v32 = vmul.f32 %v4385_v25, %v2868_v4 }
0x1a8c   :  { %v2890_v13 = vmul.f32 %v3446_v27, %v2884_v32 }
0x1a8d   :  { %v4387_v35 = vpop.eup %4386 }
0x1a8e   :  { %v2885_v3 = vmul.f32 %v4387_v35, %v2869_v63  ;;  %v2896_v18 = vadd.f32 %v3447_v34, %v2890_v13 }
0x1a90   :  { %v2891_v38 = vmul.f32 %v3446_v27, %v2885_v3  ;;  %3885 = vmatprep.mubr.msk.f32.mxu1 %vm41_vm0, %v2896_v18 }
0x1a92   :  { %v2897_v6 = vadd.f32 %v3447_v34, %v2891_v38 }
0x1a94   :  { %3886 = vmatmul.mubr.msk.f32.vlgmr.msra.gmra.mrb[30].mxu1 %vm41_vm0, %v2897_v6 }
0x1a95   :  { %3915 = vmatprep.mubr.msk.f32.mxu1 %vm4434_vm4, %v4435_v5 }
0x1b67   :  { %v3887_v39 = vpop.f32.mrb[30].mxu1 }
0x1b68   :  { %v2985_v31 = vadd.f32 %v3887_v39, %v3448_v28  ;;  %v2979_v17 = vpop.f32.mrb[31].mxu1 }
0x1b69   :  { %v2980_v14 = vadd.f32 %v3448_v28, %v2979_v17 }
0x1b6a   :  { %v2991_v8 = vmul.f32 0.044715, %v2985_v31  ;;  %v2989_v44 = vmul.f32 0.5, %v2985_v31 }
0x1b6b   :  { %v2990_v7 = vmul.f32 0.044715, %v2980_v14  ;;  %v2988_v63 = vmul.f32 0.5, %v2980_v14 }
0x1b6c   :  { %v2993_v55 = vmul.f32 %v2991_v8, %v2985_v31 }
0x1b6d   :  { %v2992_v40 = vmul.f32 %v2990_v7, %v2980_v14  ;;  %v3454_v7 = vld [vmem:[%s5182_s5 + $0x6] ss:$0 sm:$0xff] }
0x1b6e   :  { %v2995_v56 = vmul.f32 %v2993_v55, %v2985_v31 }
0x1b6f   :  { %v2994_v57 = vmul.f32 %v2992_v40, %v2980_v14 }
0x1b70   :  { %v2997_v58 = vadd.f32 %v2995_v56, %v2985_v31 }
0x1b71   :  { %v2996_v59 = vadd.f32 %v2994_v57, %v2980_v14 }
0x1b72   :  { %v2999_v51 = vmul.f32 0.7978846, %v2997_v58  ;;  %v3455_v58 = vld [vmem:[%s5182_s5 + $0x7] ss:$0 sm:$0xff] }
0x1b73   :  { %v2998_v60 = vmul.f32 0.7978846, %v2996_v59 }
0x1b74   :  { %4388 = vtanh.f32 %v2999_v51 }
0x1b75   :  { %4390 = vtanh.f32 %v2998_v60 }
0x1b7e   :  { %v4389_v61 = vpop.eup %4388 }
0x1b7f   :  { %v4391_v62 = vpop.eup %4390  ;;  %v3003_v43 = vadd.f32 1.0, %v4389_v61 }
0x1b80   :  { %v3002_v4 = vadd.f32 1.0, %v4391_v62 }
0x1b81   :  { %v3005_v15 = vmul.f32 %v3003_v43, %v2989_v44 }
0x1b82   :  { %v3004_v12 = vmul.f32 %v3002_v4, %v2988_v63 }
0x1b84   :  { %3904 = vmatprep.mubr.msk.f32.mxu0 %vm817_vm3, %v3004_v12 }
0x1b85   :  { %3905 = vmatmul.mubr.msk.f32.vlgmr.msra.gmra.mrb[22].mxu0 %vm817_vm3, %v3005_v15 }
0x1c58   :  { %v3906_v16 = vpop.f32.mrb[22].mxu0 }
0x1c59   :  { %v3097_v22 = vadd.f32 %v3906_v16, %v3451_v36  ;;  %v3091_v52 = vpop.f32.mrb[23].mxu0 }
0x1c5a   :  { %v3092_v23 = vadd.f32 %v3451_v36, %v3091_v52  ;;  %v3456_v36 = vld [vmem:[%s5182_s5 + $0x8] ss:$0 sm:$0xff] }
0x1c5b   :  { %v3101_v10 = vadd.f32 %v3097_v22, %v2897_v6 }
0x1c5c   :  { %v3100_v11 = vadd.f32 %v3092_v23, %v2896_v18  ;;  %v4288_v18 = vpack.i.bf16 %v5047_v50, %v5042_v21 }
0x1c5d   :  { %v3107_v30 = vsel %vm41_vm0, %v3101_v10, 0.0 }
0x1c5e   :  { %3108 = vadd.xlane.f32.xlu1 %v3107_v30  ;;  %v3104_v33 = vsel %vm41_vm0, %v3100_v11, 0.0 }
0x1c5f   :  { %3105 = vadd.xlane.f32.xlu0 %v3104_v33 }
0x1ceb   :  { %v3109_v25 = vpop.xlane.xlu1 %3108 }
0x1cec   :  { %v3111_v27 = vmul.f32 0.03125, %v3109_v25  ;;  %v3106_v32 = vpop.xlane.xlu0 %3105 }
0x1ced   :  { %v3110_v34 = vmul.f32 0.03125, %v3106_v32 }
0x1cee   :  { %v3113_v13 = vsub.f32 %v3101_v10, %v3111_v27 }
0x1cef   :  { %v3112_v35 = vsub.f32 %v3100_v11, %v3110_v34 }
0x1cf0   :  { %v3115_v3 = vmul.f32 %v3113_v13, %v3113_v13 }
0x1cf1   :  { %v3114_v38 = vmul.f32 %v3112_v35, %v3112_v35 }
0x1cf2   :  { %v3119_v41 = vsel %vm41_vm0, %v3115_v3, 0.0 }
0x1cf3   :  { %3120 = vadd.xlane.f32.xlu1 %v3119_v41  ;;  %v3116_v6 = vsel %vm41_vm0, %v3114_v38, 0.0 }
0x1cf4   :  { %3117 = vadd.xlane.f32.xlu0 %v3116_v6 }
0x1d04   :  { %4289 = vrot.lane.b32.xlu1 %v4288_v18, %s4429_s25 }
0x1d08   :  { %4299 = vrot.lane.b32.xlu1 %v4288_v18, %s4431_s27 }
0x1d0a   :  { %4294 = vrot.lane.b32.xlu0 %v4293_v42, %s4429_s25 }
0x1d0c   :  { %4304 = vrot.lane.b32.xlu1 %v4293_v42, %s4431_s27 }
0x1d0e   :  { %1132 = vrot.lane.b32.xlu0 %v1128_v45, %s4431_s27 }
0x1d10   :  { %2232 = vrot.lane.b32.xlu1 %v2228_v29, %s4431_s27 }
0x1d80   :  { %v3121_v21 = vpop.xlane.xlu1 %3120 }
0x1d81   :  { %v3123_v50 = vmul.f32 0.03125, %v3121_v21  ;;  %v3118_v0 = vpop.xlane.xlu0 %3117 }
0x1d82   :  { %v3122_v1 = vmul.f32 0.03125, %v3118_v0 }
0x1d83   :  { %v3125_v2 = vadd.f32 1e-12, %v3123_v50 }
0x1d84   :  { %v3124_v46 = vadd.f32 1e-12, %v3122_v1  ;;  %v4290_v48 = vpop.permute.xlu1 %4289 }
0x1d85   :  { %4392 = vrsqrt.f32 %v3125_v2  ;;  %v4292_v49 = vunpack.i.h.bf16 %v4290_v48  ;;  %v4291_v37 = vunpack.i.l.bf16 %v4290_v48  ;;  %v4295_v53 = vpop.permute.xlu0 %4294 }
0x1d86   :  { %4394 = vrsqrt.f32 %v3124_v46  ;;  %v4297_v9 = vunpack.i.h.bf16 %v4295_v53  ;;  %v4296_v19 = vunpack.i.l.bf16 %v4295_v53 }
0x1d87   :  { %v4134_v28 = vpack.c.bf16 %v4292_v49, %v4291_v37 }
0x1d88   :  { %v4300_v24 = vpop.permute.xlu1 %4299  ;;  %v4137_v39 = vpack.c.bf16 %v4297_v9, %v4296_v19 }
0x1d89   :  { %v1133_v31 = vpop.permute.xlu0 %1132  ;;  %4135 = vmatpush3.bf16.msra.mxu1 %v4134_v28  ;;  %v4302_v59 = vunpack.i.h.bf16 %v4300_v24  ;;  %v4301_v51 = vunpack.i.l.bf16 %v4300_v24 }
0x1d8a   :  { %v1135_v17 = vsel %vm41_vm0, %v4814_v20, %v1133_v31  ;;  %4136 = vmatprep.subr.bf16.mxu1 %v4433_v54 }
0x1d8b   :  { %1137 = vst.msk [vmem:[%s5184_s7] sm:$0x3] %vm1136_vm6, %v1135_v17  ;;  %v4140_v63 = vpack.c.bf16 %v4302_v59, %v4301_v51 }
0x1d8c   :  { %v4305_v14 = vpop.permute.xlu1 %4304 }
0x1d8d   :  { %4138 = vmatpush3.bf16.msra.mxu1 %v4137_v39  ;;  %v4307_v4 = vunpack.i.h.bf16 %v4305_v14  ;;  %v4306_v44 = vunpack.i.l.bf16 %v4305_v14 }
0x1d8e   :  { %4139 = vmatprep.subr.bf16.mxu1 %v4433_v54 }
0x1d8f   :  { %v4393_v8 = vpop.eup %4392  ;;  %v4143_v15 = vpack.c.bf16 %v4307_v4, %v4306_v44 }
0x1d90   :  { %v4395_v55 = vpop.eup %4394  ;;  %v3129_v40 = vmul.f32 %v4393_v8, %v3113_v13  ;;  %v2233_v56 = vpop.permute.xlu1 %2232 }
0x1d91   :  { %v3128_v20 = vmul.f32 %v4395_v55, %v3112_v35  ;;  %v2235_v57 = vsel %vm41_vm0, %v4969_v47, %v2233_v56 }
0x1d92   :  { %3426 = vst.msk [vmem:[%s5184_s7 + $0x2] sm:$0x3] %vm1136_vm6, %v2235_v57  ;;  %v3135_v60 = vmul.f32 %v3454_v7, %v3129_v40 }
0x1d93   :  { %v3134_v61 = vmul.f32 %v3454_v7, %v3128_v20 }
0x1d94   :  { %v3141_v62 = vadd.f32 %v3455_v58, %v3135_v60 }
0x1d95   :  { %v3140_v43 = vadd.f32 %v3455_v58, %v3134_v61 }
0x1d96   :  { %v3143_v12 = vrot.slane %v3141_v62, 7  ;;  %3339 = vst.msk [vmem:[#allocation2 + $0x8] sm:$0xff] %vm41_vm0, %v3141_v62 }
0x1d97   :  { %3338 = vst.msk [vmem:[#allocation2] sm:$0xff] %vm41_vm0, %v3140_v43 }
0x1d98   :  { %v3145_v47 = vsel %vm944_vm5, %v3140_v43, %v3143_v12 }
0x1d99   :  { %3916 = vmatmul.mubr.msk.f32.vlgmr.msra.gmra.mrb[32].mxu1 %vm41_vm0, %v3145_v47 }
0x1d9a   :  { %4141 = vmatpush3.bf16.msra.mxu1 %v4140_v63  ;;  %3926 = vmatprep.mubr.msk.f32.mxu1 %vm4434_vm4, %v4435_v5 }
0x1d9b   :  { %4142 = vmatprep.subr.bf16.mxu1 %v4433_v54 }
0x1d9e   :  { %4144 = vmatpush3.bf16.msra.mxu1 %v4143_v15 }
0x1e6c   :  { %v3236_v16 = vpop.f32.mrb[32].mxu1 }
0x1e6d   :  { %v3237_v22 = vadd.f32 %v3456_v36, %v3236_v16  ;;  %v3917_v52 = vpop.f32.mrb[33].mxu1 }
0x1e6f   :  { %4396 = vtanh.f32 %v3237_v22 }
0x1e79   :  { %v4397_v23 = vpop.eup %4396 }
0x1e7a   :  { %3927 = vmatmul.mubr.msk.f32.vlgmr.msra.gmra.mrb[34].mxu1 %vm41_vm0, %v4397_v23 }
0x1e7b   :  { %4413 = shalt.err (!%p4410_p4)
}
0x1e7c   :  { %s4414_s26 = scalar_lea.hbm %s5183_s6, 256 }
0x1e7d   :  { %p4415_p5 = scmp.ne.s32.totalorder %s5183_s6, %s4414_s26  ;;  %p4418_p6 = scmp.lt.u32.totalorder %s4414_s26, %s5183_s6 }
0x1e7f   :  { %p4420_p7 = pnand %p4418_p6, %p4415_p5 }
0x1e81   :  { %4423 = shalt.err (!%p4420_p7)
}
0x1e82   :  { %s4437_s18 = smov 128   ;;  %s4438_s19 = smov 8   ;;  %v3458_v54 = vld [vmem:[%s5182_s5 + $0x9] ss:$0 sm:$0xff] }
0x1e83   :  { %3351 = dma.vmem_to_hbm [thread:$0]  %s3346_s11, 256, %s5183_s6, [#allocation3], %s4437_s18, %s4437_s18, %s4438_s19  }
0x1f4d   :  { %v3327_v5 = vpop.f32.mrb[34].mxu1 }
0x1f4e   :  { %v3328_v10 = vadd.f32 %v3458_v54, %v3327_v5  ;;  %v3928_v11 = vpop.f32.mrb[35].mxu1 }
0x1f50   :  { %3332 = vrot.lane.b32.xlu0 %v3328_v10, %s4431_s27 }
0x1fc2   :  { %v3333_v30 = vpop.permute.xlu0 %3332 }
0x1fc3   :  { %v3335_v33 = vsel %vm41_vm0, %v4397_v23, %v3333_v30 }
0x1fc4   :  { %3460 = vst.msk [vmem:[%s5184_s7 + $0x4] sm:$0x3] %vm1136_vm6, %v3335_v33 }
0x1fc5   :  { %4424 = dma.done.wait [#allocation3], 256  }
0x1fc6   :  { %4425 = vsyncadd [#allocation3], 4294967040 }
0x1fc7   :  { %3359 = vsyncpa [#allocation3], 1 }

</bundles_post_ra>
